<compile_context>
chip_gen: v7x
topology: tpu7x:2x2x1
jax: 0.10.0
libtpu: 0.0.40
codegen_flags: <defaults>
</compile_context>

<pallas_src>
import jax
import jax.numpy as jnp
from jax import lax
from jax.experimental import pallas as pl
from jax.experimental.pallas import tpu as pltpu

BN_EPS = 1e-5
LANE = 128


def _round_up(a, m):
    return ((a + m - 1) // m) * m


def _choose_batch_tile(B):
    """Batch rows per grid step: multiple of 8 (keeps tb*9 sublane-aligned),
    at most 128 rows per step (~11 MiB of intermediates), and >= 2 grid steps
    whenever B allows so v7x's two TensorCores both get work."""
    return min(128, max(8, _round_up(-(-B // 2), 8)))


def _perm_classifier_kernel(xp_ref, w1_ref, b1_ref, w2_ref, b2_ref,
                            w3_ref, b3_ref, w4_ref, b4_ref, out_ref):
    rows = xp_ref.shape[0]            # tb * 9  (batch rows * conv2 out positions)
    tb = out_ref.shape[0]             # batch tile
    pos = rows // tb                  # 9
    p_pad = w2_ref.shape[1]           # 128 (padded projection dim)

    # conv1 (1x1) + folded BN2d + ReLU: all 9 taps in one MXU matmul against the
    # block-diagonal weight; output is already tap-major, ready for fused conv2.
    z1 = jnp.dot(xp_ref[...], w1_ref[...], preferred_element_type=jnp.float32)
    h1 = jnp.maximum(z1 + b1_ref[...], 0.0).astype(jnp.bfloat16)    # (rows, 9*p_pad)

    # conv2 (3x3, stride 2) + folded BN2d + ReLU: single stacked-K matmul (K=1152).
    z2 = jnp.dot(h1, w2_ref[...], preferred_element_type=jnp.float32)
    h2 = jnp.maximum(z2 + b2_ref[...], 0.0).astype(jnp.bfloat16)    # (rows, p_pad)

    # torch flatten: lay the 9 output positions along lanes -> (tb, 9*p_pad).
    # One sublane->lane relayout (lane-dim concatenate), done once per tile.
    h2_3d = h2.reshape(tb, pos, p_pad)
    h2f = jnp.concatenate([h2_3d[:, s, :] for s in range(pos)], axis=-1)

    # fc1 + folded BN1d + ReLU: single stacked-K matmul.  Dropout(0.5) = identity (eval).
    z3 = jnp.dot(h2f, w3_ref[...], preferred_element_type=jnp.float32)
    h3 = jnp.maximum(z3 + b3_ref[...], 0.0).astype(jnp.bfloat16)    # (tb, p_pad)

    # fc2
    out_ref[...] = (jnp.dot(h3, w4_ref[...], preferred_element_type=jnp.float32)
                    + b4_ref[...]).astype(out_ref.dtype)


def prepare_params(p, eps=BN_EPS, lane=LANE):
    """Fold every BatchNorm (eval) into the preceding conv/linear, build the
    block-diagonal conv1 weight and the stacked-K conv2/fc1 weights, pad feature
    dims to lane-dense multiples of 128, cast weights to bf16.
    Call ONCE per set of weights and cache the result."""
    P, c_in = p["conv1_w"].shape
    cls = p["fc2_w"].shape[0]
    taps = 9                      # 3x3 conv2 kernel taps
    pos = 9                       # 3x3 conv2 output positions (fc1 expects P*3*3)
    p_pad = _round_up(P, lane)    # 128
    c_pad = _round_up(cls, lane)  # 128
    k1 = taps * c_in              # 72
    k1_pad = _round_up(k1, lane)  # 128

    # conv1 ∘ BN1 (1x1)  -> block-diagonal [k1_pad, taps*p_pad]
    s1 = p["bn1_gamma"] * lax.rsqrt(p["bn1_var"] + eps)
    w1 = (p["conv1_w"] * s1[:, None]).T                              # [c_in, P]
    b1 = (p["conv1_b"] - p["bn1_mean"]) * s1 + p["bn1_beta"]         # [P]
    w1p = jnp.pad(w1, ((0, 0), (0, p_pad - P)))                      # [c_in, p_pad]
    w1_bd = jnp.zeros((k1_pad, taps * p_pad), jnp.float32)
    for t in range(taps):
        w1_bd = w1_bd.at[t * c_in:(t + 1) * c_in,
                         t * p_pad:(t + 1) * p_pad].set(w1p)
    b1_t = jnp.tile(jnp.pad(b1, (0, p_pad - P)), (taps,)).reshape(1, taps * p_pad)

    # conv2 ∘ BN2 -> tap-major stacked [taps*p_pad, p_pad]
    s2 = p["bn2_gamma"] * lax.rsqrt(p["bn2_var"] + eps)
    w2 = p["conv2_w"] * s2[:, None, None, None]                      # [O, I, 3, 3]
    w2 = jnp.transpose(w2, (2, 3, 1, 0)).reshape(taps, P, P)         # [tap, in, out]
    w2 = jnp.pad(w2, ((0, 0), (0, p_pad - P), (0, p_pad - P)))
    w2_stk = w2.reshape(taps * p_pad, p_pad)
    b2 = (p["conv2_b"] - p["bn2_mean"]) * s2 + p["bn2_beta"]
    b2p = jnp.pad(b2, (0, p_pad - P)).reshape(1, p_pad)

    # fc1 ∘ BN3 -> pos-major stacked [pos*p_pad, p_pad]
    # (torch flatten of [B, P, 3, 3] gives feature index = channel*9 + pos)
    s3 = p["bn3_gamma"] * lax.rsqrt(p["bn3_var"] + eps)
    w3 = (p["fc1_w"] * s3[:, None]).T                                # [P*9, P]
    w3 = jnp.transpose(w3.reshape(P, pos, P), (1, 0, 2))             # [pos, in, out]
    w3 = jnp.pad(w3, ((0, 0), (0, p_pad - P), (0, p_pad - P)))
    w3_stk = w3.reshape(pos * p_pad, p_pad)
    b3 = (p["fc1_b"] - p["bn3_mean"]) * s3 + p["bn3_beta"]
    b3p = jnp.pad(b3, (0, p_pad - P)).reshape(1, p_pad)

    # fc2
    w4 = jnp.pad(p["fc2_w"].T, ((0, p_pad - P), (0, c_pad - cls)))
    b4 = jnp.pad(p["fc2_b"], (0, c_pad - cls)).reshape(1, c_pad)

    bf16 = jnp.bfloat16
    return dict(
        class_num=cls, c_in=c_in,
        w1=w1_bd.astype(bf16), b1=b1_t.astype(jnp.float32),
        w2=w2_stk.astype(bf16), b2=b2p.astype(jnp.float32),
        w3=w3_stk.astype(bf16), b3=b3p.astype(jnp.float32),
        w4=w4.astype(bf16), b4=b4.astype(jnp.float32),
    )


def perm_classifier_forward(x, prepared):
    """x: [B, C_in, 7, 7] float32.  Returns logits [B, class_num] float32."""
    B, c_in, H, W = x.shape
    KH = KW = 3
    SH = SW = 2
    OH = (H - KH) // SH + 1
    OW = (W - KW) // SW + 1
    assert OH == 3 and OW == 3, "PermClassifier's fc1 expects a 3x3 conv2 output"
    POS, TAPS = OH * OW, KH * KW

    p_pad = prepared["w2"].shape[1]
    c_pad = prepared["w4"].shape[1]
    cls = prepared["class_num"]
    k1 = TAPS * c_in
    k1_pad = prepared["w1"].shape[0]
    assert prepared["w1"].shape[1] == TAPS * p_pad
    assert prepared["w2"].shape[0] == TAPS * p_pad

    # im2col of the RAW input (the 1x1 conv commutes with patch extraction):
    # rows = (batch, out_pos), cols = (tap, channel)  -- matches the
    # block-diagonal W1 and stacked W2 layouts.  Pure layout plumbing.
    xt = jnp.transpose(x, (0, 2, 3, 1))                              # [B, H, W, C]
    tap_slices = [xt[:, ky:ky + SH * (OH - 1) + 1:SH,
                     kx:kx + SW * (OW - 1) + 1:SW, :]
                  for ky in range(KH) for kx in range(KW)]           # 9 x [B,3,3,C]
    patches = jnp.stack(tap_slices, axis=3)                          # [B,3,3,9,C]
    xp = patches.reshape(B, POS, k1)                                 # [B, 9, 72]

    tb = _choose_batch_tile(B)
    B_pad = _round_up(B, tb)
    xp = jnp.pad(xp, ((0, B_pad - B), (0, 0), (0, k1_pad - k1)))     # pad batch + lanes
    xp2d = xp.reshape(B_pad * POS, k1_pad).astype(jnp.bfloat16)      # [B_pad*9, 128]

    grid = (B_pad // tb,)

    def wspec(a):
        nd = a.ndim
        return pl.BlockSpec(a.shape, lambda i, _nd=nd: (0,) * _nd)

    logits_pad = pl.pallas_call(
        _perm_classifier_kernel,
        out_shape=jax.ShapeDtypeStruct((B_pad, c_pad), jnp.float32),
        grid=grid,
        in_specs=[
            pl.BlockSpec((tb * POS, k1_pad), lambda i: (i, 0)),
            wspec(prepared["w1"]), wspec(prepared["b1"]),
            wspec(prepared["w2"]), wspec(prepared["b2"]),
            wspec(prepared["w3"]), wspec(prepared["b3"]),
            wspec(prepared["w4"]), wspec(prepared["b4"]),
        ],
        out_specs=pl.BlockSpec((tb, c_pad), lambda i: (i, 0)),
        compiler_params=pltpu.CompilerParams(
            dimension_semantics=("parallel",),
            vmem_limit_bytes=32 * 1024 * 1024),
    )(xp2d,
      prepared["w1"], prepared["b1"],
      prepared["w2"], prepared["b2"],
      prepared["w3"], prepared["b3"],
      prepared["w4"], prepared["b4"])

    return logits_pad[:B, :cls]


def init_params(key, input_dim, projection_dim=100, class_num=9):
    P = projection_dim
    ks = jax.random.split(key, 20)
    n = lambda k, s, sc=0.05: sc * jax.random.normal(k, s, jnp.float32)
    u = lambda k, s: jax.random.uniform(k, s, jnp.float32)
    return dict(
        conv1_w=n(ks[0], (P, input_dim)), conv1_b=n(ks[1], (P,)),
        bn1_gamma=1.0 + n(ks[2], (P,), 0.1), bn1_beta=n(ks[3], (P,), 0.1),
        bn1_mean=n(ks[4], (P,), 0.1), bn1_var=1.0 + 0.2 * u(ks[5], (P,)),
        conv2_w=n(ks[6], (P, P, 3, 3)), conv2_b=n(ks[7], (P,)),
        bn2_gamma=1.0 + n(ks[8], (P,), 0.1), bn2_beta=n(ks[9], (P,), 0.1),
        bn2_mean=n(ks[10], (P,), 0.1), bn2_var=1.0 + 0.2 * u(ks[11], (P,)),
        fc1_w=n(ks[12], (P, P * 9)), fc1_b=n(ks[13], (P,)),
        bn3_gamma=1.0 + n(ks[14], (P,), 0.1), bn3_beta=n(ks[15], (P,), 0.1),
        bn3_mean=n(ks[16], (P,), 0.1), bn3_var=1.0 + 0.2 * u(ks[17], (P,)),
        fc2_w=n(ks[18], (class_num, P)), fc2_b=n(ks[19], (class_num,)),
    )


def reference_forward(x, p, eps=BN_EPS):
    """Faithful f32 eval-mode forward of the PyTorch module."""
    def bn4(z, g, b, m, v):
        s = (g / jnp.sqrt(v + eps))[None, :, None, None]
        return (z - m[None, :, None, None]) * s + b[None, :, None, None]

    z = lax.conv_general_dilated(
        x, p["conv1_w"][:, :, None, None], window_strides=(1, 1), padding="VALID",
        dimension_numbers=("NCHW", "OIHW", "NCHW")) + p["conv1_b"][None, :, None, None]
    h = jnp.maximum(bn4(z, p["bn1_gamma"], p["bn1_beta"], p["bn1_mean"], p["bn1_var"]), 0.0)

    z = lax.conv_general_dilated(
        h, p["conv2_w"], window_strides=(2, 2), padding="VALID",
        dimension_numbers=("NCHW", "OIHW", "NCHW")) + p["conv2_b"][None, :, None, None]
    h = jnp.maximum(bn4(z, p["bn2_gamma"], p["bn2_beta"], p["bn2_mean"], p["bn2_var"]), 0.0)

    flat = h.reshape(h.shape[0], -1)                      # torch flatten: [B, P*3*3]
    z = flat @ p["fc1_w"].T + p["fc1_b"]
    s3 = p["bn3_gamma"] / jnp.sqrt(p["bn3_var"] + eps)
    h = jnp.maximum((z - p["bn3_mean"]) * s3 + p["bn3_beta"], 0.0)
    # Dropout(0.5) is identity in eval mode.
    return h @ p["fc2_w"].T + p["fc2_b"]


if __name__ == "__main__":
    key = jax.random.PRNGKey(0)
    kx, kx2, kp = jax.random.split(key, 3)

    C_IN, H, W = 8, 7, 7
    PROJ, CLS = 100, 9

    params = init_params(kp, C_IN, projection_dim=PROJ, class_num=CLS)
    prepared = prepare_params(params)          # fold BN / pad / bf16 — done once

    # Small batch (single grid step, batch padded 2 -> 8).
    x = jax.random.normal(kx, (2, C_IN, H, W), jnp.float32)
    logits = perm_classifier_forward(x, prepared)
    jax.block_until_ready(logits)
    ref = reference_forward(x, params)
    assert logits.shape == (2, CLS), logits.shape
    assert jnp.allclose(logits, ref, atol=2e-2, rtol=2e-2), float(
        jnp.max(jnp.abs(logits - ref)))

    # Larger, non-tile-aligned batch (exercises padding + 2 parallel grid steps).
    x2 = jax.random.normal(kx2, (24, C_IN, H, W), jnp.float32)
    logits2 = perm_classifier_forward(x2, prepared)
    jax.block_until_ready(logits2)
    ref2 = reference_forward(x2, params)
    assert logits2.shape == (24, CLS), logits2.shape
    assert jnp.allclose(logits2, ref2, atol=2e-2, rtol=2e-2), float(
        jnp.max(jnp.abs(logits2 - ref2)))

    print("KERNEL_OK")
</pallas_src>

<mosaic_0001>
module attributes {stable_mosaic.version = 11 : i64} {
  func.func @_perm_classifier_kernel(%arg0: i32, %arg1: memref<72x128xbf16, #tpu.memory_space<vmem>>, %arg2: memref<128x1152xbf16, #tpu.memory_space<vmem>>, %arg3: memref<1x1152xf32, #tpu.memory_space<vmem>>, %arg4: memref<1152x128xbf16, #tpu.memory_space<vmem>>, %arg5: memref<1x128xf32, #tpu.memory_space<vmem>>, %arg6: memref<1152x128xbf16, #tpu.memory_space<vmem>>, %arg7: memref<1x128xf32, #tpu.memory_space<vmem>>, %arg8: memref<128x128xbf16, #tpu.memory_space<vmem>>, %arg9: memref<1x128xf32, #tpu.memory_space<vmem>>, %arg10: memref<8x128xf32, #tpu.memory_space<vmem>>) attributes {dimension_semantics = [#tpu.dimension_semantics<parallel>], iteration_bounds = array<i64: 1>, scalar_prefetch = 0 : i64, scratch_operands = 0 : i64, tpu.core_type = #tpu.core_type<tc>, window_params = [{transform_indices = @transform_0, window_bounds = array<i64: 72, 128>}, {pipeline_mode = #tpu.pipeline_mode<synchronous>, transform_indices = @transform_1, window_bounds = array<i64: 128, 1152>}, {pipeline_mode = #tpu.pipeline_mode<synchronous>, transform_indices = @transform_2, window_bounds = array<i64: 1, 1152>}, {pipeline_mode = #tpu.pipeline_mode<synchronous>, transform_indices = @transform_3, window_bounds = array<i64: 1152, 128>}, {pipeline_mode = #tpu.pipeline_mode<synchronous>, transform_indices = @transform_4, window_bounds = array<i64: 1, 128>}, {pipeline_mode = #tpu.pipeline_mode<synchronous>, transform_indices = @transform_5, window_bounds = array<i64: 1152, 128>}, {pipeline_mode = #tpu.pipeline_mode<synchronous>, transform_indices = @transform_6, window_bounds = array<i64: 1, 128>}, {pipeline_mode = #tpu.pipeline_mode<synchronous>, transform_indices = @transform_7, window_bounds = array<i64: 128, 128>}, {pipeline_mode = #tpu.pipeline_mode<synchronous>, transform_indices = @transform_8, window_bounds = array<i64: 1, 128>}, {transform_indices = @transform_9, window_bounds = array<i64: 8, 128>}]} {
    %c0 = arith.constant 0 : index
    %c0_0 = arith.constant 0 : index
    %0 = vector.load %arg1[%c0, %c0_0] : memref<72x128xbf16, #tpu.memory_space<vmem>>, vector<72x128xbf16>
    %c0_1 = arith.constant 0 : index
    %c0_2 = arith.constant 0 : index
    %1 = vector.load %arg2[%c0_1, %c0_2] : memref<128x1152xbf16, #tpu.memory_space<vmem>>, vector<128x1152xbf16>
    %cst = arith.constant dense<0.000000e+00> : vector<72x1152xf32>
    %2 = tpu.matmul %0, %1, %cst {dimension_numbers = #tpu.dot_dimension_numbers<[1], [0], [0], [1], [0, 0, 1, 1], [], []>} : vector<72x128xbf16>, vector<128x1152xbf16>, vector<72x1152xf32> -> vector<72x1152xf32>
    %c0_3 = arith.constant 0 : index
    %c0_4 = arith.constant 0 : index
    %3 = vector.load %arg3[%c0_3, %c0_4] : memref<1x1152xf32, #tpu.memory_space<vmem>>, vector<1x1152xf32>
    %4 = vector.broadcast %3 : vector<1x1152xf32> to vector<72x1152xf32>
    %5 = arith.addf %2, %4 : vector<72x1152xf32>
    %cst_5 = arith.constant 0.000000e+00 : f32
    %6 = vector.broadcast %cst_5 : f32 to vector<72x1152xf32>
    %7 = arith.maximumf %5, %6 : vector<72x1152xf32>
    %8 = arith.truncf %7 : vector<72x1152xf32> to vector<72x1152xbf16>
    %c0_6 = arith.constant 0 : index
    %c0_7 = arith.constant 0 : index
    %9 = vector.load %arg4[%c0_6, %c0_7] : memref<1152x128xbf16, #tpu.memory_space<vmem>>, vector<1152x128xbf16>
    %cst_8 = arith.constant dense<0.000000e+00> : vector<72x128xf32>
    %10 = tpu.matmul %8, %9, %cst_8 {dimension_numbers = #tpu.dot_dimension_numbers<[1], [0], [0], [1], [0, 0, 1, 1], [], []>} : vector<72x1152xbf16>, vector<1152x128xbf16>, vector<72x128xf32> -> vector<72x128xf32>
    %c0_9 = arith.constant 0 : index
    %c0_10 = arith.constant 0 : index
    %11 = vector.load %arg5[%c0_9, %c0_10] : memref<1x128xf32, #tpu.memory_space<vmem>>, vector<1x128xf32>
    %12 = vector.broadcast %11 : vector<1x128xf32> to vector<72x128xf32>
    %13 = arith.addf %10, %12 : vector<72x128xf32>
    %cst_11 = arith.constant 0.000000e+00 : f32
    %14 = vector.broadcast %cst_11 : f32 to vector<72x128xf32>
    %15 = arith.maximumf %13, %14 : vector<72x128xf32>
    %16 = arith.truncf %15 : vector<72x128xf32> to vector<72x128xbf16>
    %17 = vector.shape_cast %16 : vector<72x128xbf16> to vector<8x9x128xbf16>
    %18 = vector.extract_strided_slice %17 {offsets = [0, 0, 0], sizes = [8, 1, 128], strides = [1, 1, 1]} : vector<8x9x128xbf16> to vector<8x1x128xbf16>
    %19 = vector.shape_cast %18 : vector<8x1x128xbf16> to vector<8x128xbf16>
    %20 = vector.extract_strided_slice %17 {offsets = [0, 1, 0], sizes = [8, 1, 128], strides = [1, 1, 1]} : vector<8x9x128xbf16> to vector<8x1x128xbf16>
    %21 = vector.shape_cast %20 : vector<8x1x128xbf16> to vector<8x128xbf16>
    %22 = vector.extract_strided_slice %17 {offsets = [0, 2, 0], sizes = [8, 1, 128], strides = [1, 1, 1]} : vector<8x9x128xbf16> to vector<8x1x128xbf16>
    %23 = vector.shape_cast %22 : vector<8x1x128xbf16> to vector<8x128xbf16>
    %24 = vector.extract_strided_slice %17 {offsets = [0, 3, 0], sizes = [8, 1, 128], strides = [1, 1, 1]} : vector<8x9x128xbf16> to vector<8x1x128xbf16>
    %25 = vector.shape_cast %24 : vector<8x1x128xbf16> to vector<8x128xbf16>
    %26 = vector.extract_strided_slice %17 {offsets = [0, 4, 0], sizes = [8, 1, 128], strides = [1, 1, 1]} : vector<8x9x128xbf16> to vector<8x1x128xbf16>
    %27 = vector.shape_cast %26 : vector<8x1x128xbf16> to vector<8x128xbf16>
    %28 = vector.extract_strided_slice %17 {offsets = [0, 5, 0], sizes = [8, 1, 128], strides = [1, 1, 1]} : vector<8x9x128xbf16> to vector<8x1x128xbf16>
    %29 = vector.shape_cast %28 : vector<8x1x128xbf16> to vector<8x128xbf16>
    %30 = vector.extract_strided_slice %17 {offsets = [0, 6, 0], sizes = [8, 1, 128], strides = [1, 1, 1]} : vector<8x9x128xbf16> to vector<8x1x128xbf16>
    %31 = vector.shape_cast %30 : vector<8x1x128xbf16> to vector<8x128xbf16>
    %32 = vector.extract_strided_slice %17 {offsets = [0, 7, 0], sizes = [8, 1, 128], strides = [1, 1, 1]} : vector<8x9x128xbf16> to vector<8x1x128xbf16>
    %33 = vector.shape_cast %32 : vector<8x1x128xbf16> to vector<8x128xbf16>
    %34 = vector.extract_strided_slice %17 {offsets = [0, 8, 0], sizes = [8, 1, 128], strides = [1, 1, 1]} : vector<8x9x128xbf16> to vector<8x1x128xbf16>
    %35 = vector.shape_cast %34 : vector<8x1x128xbf16> to vector<8x128xbf16>
    %36 = tpu.concatenate %19, %21, %23, %25, %27, %29, %31, %33, %35 in 1 : vector<8x128xbf16>, vector<8x128xbf16>, vector<8x128xbf16>, vector<8x128xbf16>, vector<8x128xbf16>, vector<8x128xbf16>, vector<8x128xbf16>, vector<8x128xbf16>, vector<8x128xbf16> -> vector<8x1152xbf16>
    %c0_12 = arith.constant 0 : index
    %c0_13 = arith.constant 0 : index
    %37 = vector.load %arg6[%c0_12, %c0_13] : memref<1152x128xbf16, #tpu.memory_space<vmem>>, vector<1152x128xbf16>
    %cst_14 = arith.constant dense<0.000000e+00> : vector<8x128xf32>
    %38 = tpu.matmul %36, %37, %cst_14 {dimension_numbers = #tpu.dot_dimension_numbers<[1], [0], [0], [1], [0, 0, 1, 1], [], []>} : vector<8x1152xbf16>, vector<1152x128xbf16>, vector<8x128xf32> -> vector<8x128xf32>
    %c0_15 = arith.constant 0 : index
    %c0_16 = arith.constant 0 : index
    %39 = vector.load %arg7[%c0_15, %c0_16] : memref<1x128xf32, #tpu.memory_space<vmem>>, vector<1x128xf32>
    %40 = vector.broadcast %39 : vector<1x128xf32> to vector<8x128xf32>
    %41 = arith.addf %38, %40 : vector<8x128xf32>
    %cst_17 = arith.constant 0.000000e+00 : f32
    %42 = vector.broadcast %cst_17 : f32 to vector<8x128xf32>
    %43 = arith.maximumf %41, %42 : vector<8x128xf32>
    %44 = arith.truncf %43 : vector<8x128xf32> to vector<8x128xbf16>
    %c0_18 = arith.constant 0 : index
    %c0_19 = arith.constant 0 : index
    %45 = vector.load %arg8[%c0_18, %c0_19] : memref<128x128xbf16, #tpu.memory_space<vmem>>, vector<128x128xbf16>
    %cst_20 = arith.constant dense<0.000000e+00> : vector<8x128xf32>
    %46 = tpu.matmul %44, %45, %cst_20 {dimension_numbers = #tpu.dot_dimension_numbers<[1], [0], [0], [1], [0, 0, 1, 1], [], []>} : vector<8x128xbf16>, vector<128x128xbf16>, vector<8x128xf32> -> vector<8x128xf32>
    %c0_21 = arith.constant 0 : index
    %c0_22 = arith.constant 0 : index
    %47 = vector.load %arg9[%c0_21, %c0_22] : memref<1x128xf32, #tpu.memory_space<vmem>>, vector<1x128xf32>
    %48 = vector.broadcast %47 : vector<1x128xf32> to vector<8x128xf32>
    %49 = arith.addf %46, %48 : vector<8x128xf32>
    %c0_23 = arith.constant 0 : index
    %c0_24 = arith.constant 0 : index
    %50 = vector.load %arg10[%c0_23, %c0_24] : memref<8x128xf32, #tpu.memory_space<vmem>>, vector<8x128xf32>
    tpu.vector_store %arg10[%c0_23, %c0_24], %49 {strides = array<i32>} : memref<8x128xf32, #tpu.memory_space<vmem>>, vector<8x128xf32>,
    return
  }
  func.func @transform_0(%arg0: i32) -> (i32, i32) {
    %c0_i32 = arith.constant 0 : i32
    %c0_i32_0 = arith.constant 0 : i32
    return %arg0, %c0_i32 : i32, i32
  }
  func.func @transform_1(%arg0: i32) -> (i32, i32) {
    %c0_i32 = arith.constant 0 : i32
    %c0_i32_0 = arith.constant 0 : i32
    %c0_i32_1 = arith.constant 0 : i32
    return %c0_i32, %c0_i32_0 : i32, i32
  }
  func.func @transform_2(%arg0: i32) -> (i32, i32) {
    %c0_i32 = arith.constant 0 : i32
    %c0_i32_0 = arith.constant 0 : i32
    %c0_i32_1 = arith.constant 0 : i32
    return %c0_i32, %c0_i32_0 : i32, i32
  }
  func.func @transform_3(%arg0: i32) -> (i32, i32) {
    %c0_i32 = arith.constant 0 : i32
    %c0_i32_0 = arith.constant 0 : i32
    %c0_i32_1 = arith.constant 0 : i32
    return %c0_i32, %c0_i32_0 : i32, i32
  }
  func.func @transform_4(%arg0: i32) -> (i32, i32) {
    %c0_i32 = arith.constant 0 : i32
    %c0_i32_0 = arith.constant 0 : i32
    %c0_i32_1 = arith.constant 0 : i32
    return %c0_i32, %c0_i32_0 : i32, i32
  }
  func.func @transform_5(%arg0: i32) -> (i32, i32) {
    %c0_i32 = arith.constant 0 : i32
    %c0_i32_0 = arith.constant 0 : i32
    %c0_i32_1 = arith.constant 0 : i32
    return %c0_i32, %c0_i32_0 : i32, i32
  }
  func.func @transform_6(%arg0: i32) -> (i32, i32) {
    %c0_i32 = arith.constant 0 : i32
    %c0_i32_0 = arith.constant 0 : i32
    %c0_i32_1 = arith.constant 0 : i32
    return %c0_i32, %c0_i32_0 : i32, i32
  }
  func.func @transform_7(%arg0: i32) -> (i32, i32) {
    %c0_i32 = arith.constant 0 : i32
    %c0_i32_0 = arith.constant 0 : i32
    %c0_i32_1 = arith.constant 0 : i32
    return %c0_i32, %c0_i32_0 : i32, i32
  }
  func.func @transform_8(%arg0: i32) -> (i32, i32) {
    %c0_i32 = arith.constant 0 : i32
    %c0_i32_0 = arith.constant 0 : i32
    %c0_i32_1 = arith.constant 0 : i32
    return %c0_i32, %c0_i32_0 : i32, i32
  }
  func.func @transform_9(%arg0: i32) -> (i32, i32) {
    %c0_i32 = arith.constant 0 : i32
    %c0_i32_0 = arith.constant 0 : i32
    return %arg0, %c0_i32 : i32, i32
  }
}

</mosaic_0001>

<bundles_post_ra>
// kernel: tpu_custom_call.1
= control target key start
LH: loop header
LB: loop body
LE: loop exit
PB: predicated region body
PF: predicated region fallthrough
CT: control target
= control target key end

     0   :  { %14 = vsyncpa [#allocation3], 0  ;;  %s5376_s0 = inlined_call_operand.hbm [shape: bf16[72,128], index: 0, kind: input, shape index: {}]   ;;  %s5377_s1 = inlined_call_operand.hbm [shape: bf16[128,1152], index: 1, kind: input, shape index: {}]   ;;  %s5378_s2 = inlined_call_operand.hbm [shape: f32[1,1152], index: 2, kind: input, shape index: {}]   ;;  %s5379_s3 = inlined_call_operand.hbm [shape: bf16[1152,128], index: 3, kind: input, shape index: {}]   ;;  %s5380_s4 = inlined_call_operand.vmem [shape: f32[1,128], index: 4, kind: input, shape index: {}]   ;;  %s5381_s5 = inlined_call_operand.hbm [shape: bf16[1152,128], index: 5, kind: input, shape index: {}]   ;;  %s5382_s6 = inlined_call_operand.vmem [shape: f32[1,128], index: 6, kind: input, shape index: {}]   ;;  %s5383_s7 = inlined_call_operand.hbm [shape: bf16[128,128], index: 7, kind: input, shape index: {}]   ;;  %s5384_s8 = inlined_call_operand.vmem [shape: f32[1,128], index: 8, kind: input, shape index: {}]   ;;  %s5385_s9 = inlined_call_operand.hbm [shape: f32[8,128], index: 9, kind: output, shape index: {}]  }
   0x1   :  { %15 = vsyncpa [#allocation6], 0 }
   0x2   :  { %16 = vsyncpa [#allocation9], 0 }
   0x3   :  { %17 = vsyncpa [#allocation12], 0 }
   0x4   :  { %18 = vsyncpa [#allocation4], 0  ;;  %s4741_s30 = smov [#allocation5]   ;;  %s4577_s13 = scalar_lea.hbm %s5377_s1, 9216 }
   0x5   :  { %s36_s10 = sshll.u32 %s4741_s30, 4  ;;  %p4578_p0 = scmp.ne.s32.totalorder %s5377_s1, %s4577_s13  ;;  %s37_s10 = int_to_ptr.vmem [resolvable:$true] %s36_s10 }
   0x6   :  { %p4581_p1 = scmp.lt.u32.totalorder %s4577_s13, %s5377_s1 }
   0x8   :  { %p4583_p2 = pnand %p4581_p1, %p4578_p0 }
   0xa   :  { %4586 = shalt.err (!%p4583_p2)
}
   0xb   :  { %s4587_s18 = scalar_lea.vmem %s37_s10, 9216  ;;  %p4592_p4 = scmp.lt.s32.totalorder %s37_s10, %s37_s10 }
   0xc   :  { %p4588_p3 = scmp.ne.s32.totalorder %s37_s10, %s4587_s18  ;;  %p4593_p5 = scmp.lt.s32.totalorder %s4587_s18, %s4587_s18 }
   0xe   :  { %p4594_p6 = por %p4593_p5, %p4592_p4 }
  0x10   :  { %p4595_p7 = pnand %p4594_p6, %p4588_p3 }
  0x12   :  { %4598 = shalt.err (!%p4595_p7)
}
  0x13   :  { %s4742_s19 = smov 576   ;;  %s4743_s20 = smov 36  }
  0x14   :  { %42 = dma.hbm_to_vmem [thread:$0]  %s5377_s1, 9216, %s37_s10, [#allocation6], %s4742_s19, %s4742_s19, %s4743_s20  }
  0x15   :  { %s4744_s23 = smov [#allocation8]   ;;  %s4745_s25 = smov [#allocation2]  }
  0x16   :  { %s58_s24 = sshll.u32 %s4744_s23, 4  ;;  %s24_s26 = sshll.u32 %s4745_s25, 4  ;;  %s59_s24 = int_to_ptr.vmem [resolvable:$true] %s58_s24  ;;  %s25_s26 = int_to_ptr.vmem [resolvable:$true] %s24_s26 }
  0x17   :  { %s4599_s29 = scalar_lea.hbm %s5379_s3, 9216 }
  0x18   :  { %p4600_p8 = scmp.ne.s32.totalorder %s5379_s3, %s4599_s29  ;;  %p4603_p9 = scmp.lt.u32.totalorder %s4599_s29, %s5379_s3 }
  0x1a   :  { %p4605_p10 = pnand %p4603_p9, %p4600_p8 }
  0x1c   :  { %4608 = shalt.err (!%p4605_p10)
}
  0x1d   :  { %s4609_s1 = scalar_lea.vmem %s59_s24, 9216  ;;  %p4614_p12 = scmp.lt.s32.totalorder %s59_s24, %s59_s24 }
  0x1e   :  { %p4610_p11 = scmp.ne.s32.totalorder %s59_s24, %s4609_s1  ;;  %p4615_p13 = scmp.lt.s32.totalorder %s4609_s1, %s4609_s1 }
  0x20   :  { %p4616_p0 = por %p4615_p13, %p4614_p12 }
  0x22   :  { %p4617_p1 = pnand %p4616_p0, %p4610_p11 }
  0x24   :  { %4620 = shalt.err (!%p4617_p1)
}
  0x25   :  { %s4746_s10 = smov 64   ;;  %s4747_s14 = smov 4  }
  0x26   :  { %64 = dma.hbm_to_vmem [thread:$0]  %s5379_s3, 9216, %s59_s24, [#allocation9], %s4746_s10, %s4746_s10, %s4747_s14  }
  0x27   :  { %s4621_s19 = scalar_lea.hbm %s5376_s0, 576 }
  0x28   :  { %p4622_p2 = scmp.ne.s32.totalorder %s5376_s0, %s4621_s19  ;;  %p4625_p3 = scmp.lt.u32.totalorder %s4621_s19, %s5376_s0 }
  0x2a   :  { %p4627_p4 = pnand %p4625_p3, %p4622_p2 }
  0x2c   :  { %4630 = shalt.err (!%p4627_p4)
}
  0x2d   :  { %s4631_s25 = scalar_lea.vmem %s25_s26, 576  ;;  %p4636_p6 = scmp.lt.s32.totalorder %s25_s26, %s25_s26 }
  0x2e   :  { %p4632_p5 = scmp.ne.s32.totalorder %s25_s26, %s4631_s25  ;;  %p4637_p7 = scmp.lt.s32.totalorder %s4631_s25, %s4631_s25 }
  0x30   :  { %p4638_p8 = por %p4637_p7, %p4636_p6 }
  0x32   :  { %p4639_p9 = pnand %p4638_p8, %p4632_p5 }
  0x34   :  { %4642 = shalt.err (!%p4639_p9)
}
  0x35   :  { %30 = dma.hbm_to_vmem [thread:$0]  %s5376_s0, 576, %s25_s26, [#allocation3], %s4746_s10, %s4746_s10, %s4747_s14  }
  0x36   :  { %s4748_s27 = smov [#allocation7]   ;;  %s4749_s29 = smov [#allocation10]  }
  0x37   :  { %s49_s28 = sshll.u32 %s4748_s27, 4  ;;  %s72_s30 = sshll.u32 %s4749_s29, 4  ;;  %s50_s28 = int_to_ptr.vmem [resolvable:$true] %s49_s28  ;;  %s73_s30 = int_to_ptr.vmem [resolvable:$true] %s72_s30 }
  0x38   :  { %s4643_s13 = scalar_lea.hbm %s5378_s2, 144 }
  0x39   :  { %p4644_p10 = scmp.ne.s32.totalorder %s5378_s2, %s4643_s13  ;;  %p4647_p11 = scmp.lt.u32.totalorder %s4643_s13, %s5378_s2 }
  0x3b   :  { %p4649_p12 = pnand %p4647_p11, %p4644_p10 }
  0x3d   :  { %4652 = shalt.err (!%p4649_p12)
}
  0x3e   :  { %s4653_s0 = scalar_lea.vmem %s50_s28, 144  ;;  %s4657_s26 = scalar_lea.vmem %s50_s28, 160 }
  0x3f   :  { %p4654_p13 = scmp.ne.s32.totalorder %s50_s28, %s4653_s0  ;;  %p4658_p0 = scmp.lt.s32.totalorder %s50_s28, %s50_s28 }
  0x40   :  { %p4659_p1 = scmp.lt.s32.totalorder %s4657_s26, %s4653_s0 }
  0x42   :  { %p4660_p2 = por %p4659_p1, %p4658_p0 }
  0x44   :  { %p4661_p3 = pnand %p4660_p2, %p4654_p13 }
  0x46   :  { %4664 = shalt.err (!%p4661_p3)
}
  0x47   :  { %52 = dma.hbm_to_vmem [thread:$0]  %s5378_s2, 144, %s50_s28, [#allocation6]  }
  0x48   :  { %s4665_s22 = scalar_lea.hbm %s5381_s5, 9216 }
  0x49   :  { %p4666_p4 = scmp.ne.s32.totalorder %s5381_s5, %s4665_s22  ;;  %p4669_p5 = scmp.lt.u32.totalorder %s4665_s22, %s5381_s5 }
  0x4b   :  { %p4671_p6 = pnand %p4669_p5, %p4666_p4 }
  0x4d   :  { %4674 = shalt.err (!%p4671_p6)
}
  0x4e   :  { %s4675_s27 = scalar_lea.vmem %s73_s30, 9216  ;;  %p4680_p8 = scmp.lt.s32.totalorder %s73_s30, %s73_s30 }
  0x4f   :  { %p4676_p7 = scmp.ne.s32.totalorder %s73_s30, %s4675_s27  ;;  %p4681_p9 = scmp.lt.s32.totalorder %s4675_s27, %s4675_s27 }
  0x51   :  { %p4682_p10 = por %p4681_p9, %p4680_p8 }
  0x53   :  { %p4683_p11 = pnand %p4682_p10, %p4676_p7 }
  0x55   :  { %4686 = shalt.err (!%p4683_p11)
}
  0x56   :  { %78 = dma.hbm_to_vmem [thread:$0]  %s5381_s5, 9216, %s73_s30, [#allocation9], %s4746_s10, %s4746_s10, %s4747_s14  }
  0x57   :  { %s4750_s29 = smov [#allocation11]   ;;  %s4687_s1 = scalar_lea.hbm %s5383_s7, 1024 }
  0x58   :  { %s86_s11 = sshll.u32 %s4750_s29, 4  ;;  %p4688_p12 = scmp.ne.s32.totalorder %s5383_s7, %s4687_s1  ;;  %s87_s11 = int_to_ptr.vmem [resolvable:$true] %s86_s11 }
  0x59   :  { %p4691_p13 = scmp.lt.u32.totalorder %s4687_s1, %s5383_s7 }
  0x5b   :  { %p4693_p0 = pnand %p4691_p13, %p4688_p12 }
  0x5d   :  { %4696 = shalt.err (!%p4693_p0)
}
  0x5e   :  { %s4697_s26 = scalar_lea.vmem %s87_s11, 1024  ;;  %p4702_p2 = scmp.lt.s32.totalorder %s87_s11, %s87_s11 }
  0x5f   :  { %p4698_p1 = scmp.ne.s32.totalorder %s87_s11, %s4697_s26  ;;  %p4703_p3 = scmp.lt.s32.totalorder %s4697_s26, %s4697_s26 }
  0x61   :  { %p4704_p4 = por %p4703_p3, %p4702_p2 }
  0x63   :  { %p4705_p5 = pnand %p4704_p4, %p4698_p1 }
  0x65   :  { %4708 = shalt.err (!%p4705_p5)
}
  0x66   :  { %92 = dma.hbm_to_vmem [thread:$0]  %s5383_s7, 1024, %s87_s11, [#allocation12], %s4746_s10, %s4746_s10, %s4747_s14  }
  0x67   :  { %4731 = dma.done.wait [#allocation3], 576  }
  0x68   :  { %4732 = vsyncadd [#allocation3], 4294966720 }
  0x69   :  { %4733 = dma.done.wait [#allocation6], 9360  }
  0x6a   :  { %4734 = vsyncadd [#allocation6], 4294957936 }
  0x6b   :  { %4735 = dma.done.wait [#allocation9], 18432  }
  0x6c   :  { %4736 = vsyncadd [#allocation9], 4294948864 }
  0x6d   :  { %4737 = dma.done.wait [#allocation12], 1024  }
  0x6e   :  { %4738 = vsyncadd [#allocation12], 4294966272  ;;  %v4751_v0 = vmov 0   ;;  %v4316_v1 = vld [vmem:[#allocation5 + $0x4] ss:$36 sps:$4 sm:$0xff]   ;;  %v4892_v34 = vld [vmem:[#allocation2] sm:$0xff]  }
  0x6f   :  { %680 = vmatprep.mubr.bf16.mxu0 %v4751_v0  ;;  %761 = vmatprep.mubr.bf16.mxu1 %v4751_v0  ;;  %v4318_v2 = vld [vmem:[#allocation5] ss:$36 sps:$4 sm:$0xff]   ;;  %v4319_v3 = vld [vmem:[#allocation5 + $0xc] ss:$36 sps:$4 sm:$0xff]   ;;  %v4325_v7 = vld [vmem:[#allocation5 + $0x54] ss:$36 sps:$4 sm:$0xff]  }
  0x70   :  { %648 = vmatprep.subr.bf16.mxu0 %v4316_v1  ;;  %v4321_v4 = vld [vmem:[#allocation5 + $0x8] ss:$36 sps:$4 sm:$0xff]   ;;  %729 = vmatprep.subr.bf16.mxu1 %v4319_v3  ;;  %v4327_v8 = vld [vmem:[#allocation5 + $0x50] ss:$36 sps:$4 sm:$0xff]   ;;  %v4331_v11 = vld [vmem:[#allocation5 + $0x9c] ss:$36 sps:$4 sm:$0xff]  }
  0x71   :  { %649 = vmatpush1.bf16.msra.mxu0 %v4318_v2  ;;  %v4322_v5 = vld [vmem:[#allocation5 + $0x4c] ss:$36 sps:$4 sm:$0xff]   ;;  %730 = vmatpush1.bf16.msra.mxu1 %v4321_v4  ;;  %v4328_v9 = vld [vmem:[#allocation5 + $0x94] ss:$36 sps:$4 sm:$0xff]   ;;  %v4334_v12 = vld [vmem:[#allocation5 + $0xdc] ss:$36 sps:$4 sm:$0xff]  }
  0x72   :  { %v4324_v6 = vld [vmem:[#allocation5 + $0x48] ss:$36 sps:$4 sm:$0xff]   ;;  %650 = vmatprep.subr.bf16.mxu0 %v4322_v5  ;;  %731 = vmatprep.subr.bf16.mxu1 %v4325_v7  ;;  %v4330_v10 = vld [vmem:[#allocation5 + $0x90] ss:$36 sps:$4 sm:$0xff]   ;;  %v4333_v13 = vld [vmem:[#allocation5 + $0x98] ss:$36 sps:$4 sm:$0xff]  }
  0x73   :  { %v4337_v14 = vld [vmem:[#allocation5 + $0xe4] ss:$36 sps:$4 sm:$0xff]   ;;  %v4336_v15 = vld [vmem:[#allocation5 + $0xd8] ss:$36 sps:$4 sm:$0xff]   ;;  %v4343_v18 = vld [vmem:[#allocation5 + $0x12c] ss:$36 sps:$4 sm:$0xff]  }
  0x74   :  { %v4340_v16 = vld [vmem:[#allocation5 + $0x124] ss:$36 sps:$4 sm:$0xff]   ;;  %v4346_v20 = vld [vmem:[#allocation5 + $0x16c] ss:$36 sps:$4 sm:$0xff]   ;;  %v4349_v22 = vld [vmem:[#allocation5 + $0x174] ss:$36 sps:$4 sm:$0xff]  }
  0x75   :  { %651 = vmatpush1.bf16.msra.mxu0 %v4324_v6  ;;  %732 = vmatpush1.bf16.msra.mxu1 %v4327_v8  ;;  %v4339_v17 = vld [vmem:[#allocation5 + $0xe0] ss:$36 sps:$4 sm:$0xff]   ;;  %v4345_v21 = vld [vmem:[#allocation5 + $0x128] ss:$36 sps:$4 sm:$0xff]   ;;  %v4352_v24 = vld [vmem:[#allocation5 + $0x1b4] ss:$36 sps:$4 sm:$0xff]  }
  0x76   :  { %652 = vmatprep.subr.bf16.mxu0 %v4328_v9  ;;  %733 = vmatprep.subr.bf16.mxu1 %v4331_v11  ;;  %v4342_v19 = vld [vmem:[#allocation5 + $0x120] ss:$36 sps:$4 sm:$0xff]   ;;  %v4348_v23 = vld [vmem:[#allocation5 + $0x168] ss:$36 sps:$4 sm:$0xff]   ;;  %v4351_v25 = vld [vmem:[#allocation5 + $0x170] ss:$36 sps:$4 sm:$0xff]  }
  0x77   :  { %v4355_v26 = vld [vmem:[#allocation5 + $0x1bc] ss:$36 sps:$4 sm:$0xff]   ;;  %v4354_v27 = vld [vmem:[#allocation5 + $0x1b0] ss:$36 sps:$4 sm:$0xff]   ;;  %v4361_v30 = vld [vmem:[#allocation5 + $0x204] ss:$36 sps:$4 sm:$0xff]  }
  0x78   :  { %v4358_v28 = vld [vmem:[#allocation5 + $0x1fc] ss:$36 sps:$4 sm:$0xff]   ;;  %v4367_v32 = vld [vmem:[#allocation5 + $0x14] ss:$36 sps:$4 sm:$0xff]   ;;  %v4380_v39 = vld [vmem:[#allocation5 + $0x64] ss:$36 sps:$4 sm:$0xff]  }
  0x79   :  { %653 = vmatpush1.bf16.msra.mxu0 %v4330_v10  ;;  %734 = vmatpush1.bf16.msra.mxu1 %v4333_v13  ;;  %v4357_v29 = vld [vmem:[#allocation5 + $0x1b8] ss:$36 sps:$4 sm:$0xff]   ;;  %v4363_v33 = vld [vmem:[#allocation5 + $0x200] ss:$36 sps:$4 sm:$0xff]   ;;  %v4365_v36 = vld [vmem:[#allocation5 + $0x10] ss:$36 sps:$4 sm:$0xff]  }
  0x7a   :  { %654 = vmatprep.subr.bf16.mxu0 %v4334_v12  ;;  %735 = vmatprep.subr.bf16.mxu1 %v4337_v14  ;;  %v4360_v31 = vld [vmem:[#allocation5 + $0x1f8] ss:$36 sps:$4 sm:$0xff]   ;;  %v4374_v41 = vld [vmem:[#allocation5 + $0xa4] ss:$36 sps:$4 sm:$0xff]   ;;  %v4387_v44 = vld [vmem:[#allocation5 + $0xac] ss:$36 sps:$4 sm:$0xff]  }
  0x7b   :  { %v4377_v35 = vld [vmem:[#allocation5 + $0x1c] ss:$36 sps:$4 sm:$0xff]   ;;  %v4898_v43 = vld [vmem:[#allocation2 + $0x8] sm:$0xff]   ;;  %v4383_v46 = vld [vmem:[#allocation5 + $0xec] ss:$36 sps:$4 sm:$0xff]   ;;  %v4752_v8 = vmov 0.0  }
  0x7c   :  { %v4370_v37 = vld [vmem:[#allocation5 + $0x5c] ss:$36 sps:$4 sm:$0xff]   ;;  %v4385_v47 = vld [vmem:[#allocation5 + $0xa8] ss:$36 sps:$4 sm:$0xff]   ;;  %v4393_v48 = vld [vmem:[#allocation5 + $0xf4] ss:$36 sps:$4 sm:$0xff]  }
  0x7d   :  { %655 = vmatpush1.bf16.msra.mxu0 %v4336_v15  ;;  %736 = vmatpush1.bf16.msra.mxu1 %v4339_v17  ;;  %v4375_v38 = vld [vmem:[#allocation5 + $0x18] ss:$36 sps:$4 sm:$0xff]   ;;  %v4378_v42 = vld [vmem:[#allocation5 + $0x60] ss:$36 sps:$4 sm:$0xff]   ;;  %v4381_v49 = vld [vmem:[#allocation5 + $0xe8] ss:$36 sps:$4 sm:$0xff]  }
  0x7e   :  { %656 = vmatprep.subr.bf16.mxu0 %v4340_v16  ;;  %737 = vmatprep.subr.bf16.mxu1 %v4343_v18  ;;  %v4368_v40 = vld [vmem:[#allocation5 + $0x58] ss:$36 sps:$4 sm:$0xff]   ;;  %v4372_v45 = vld [vmem:[#allocation5 + $0xa0] ss:$36 sps:$4 sm:$0xff]   ;;  %v4903_v51 = vld [vmem:[#allocation2 + $0x10] sm:$0xff]   ;;  %vm4753_vm0 = vmmov 0  }
  0x7f   :  { %v4390_v50 = vld [vmem:[#allocation5 + $0x134] ss:$36 sps:$4 sm:$0xff]   ;;  %v4400_v53 = vld [vmem:[#allocation5 + $0x13c] ss:$36 sps:$4 sm:$0xff]   ;;  %v4406_v57 = vld [vmem:[#allocation5 + $0x184] ss:$36 sps:$4 sm:$0xff]  }
  0x80   :  { %v4391_v52 = vld [vmem:[#allocation5 + $0xf0] ss:$36 sps:$4 sm:$0xff]   ;;  %v4397_v55 = vld [vmem:[#allocation5 + $0x17c] ss:$36 sps:$4 sm:$0xff]   ;;  %v4403_v60 = vld [vmem:[#allocation5 + $0x1c4] ss:$36 sps:$4 sm:$0xff]  }
  0x81   :  { %657 = vmatpush1.bf16.msra.mxu0 %v4342_v19  ;;  %738 = vmatpush1.bf16.msra.mxu1 %v4345_v21  ;;  %v4388_v54 = vld [vmem:[#allocation5 + $0x130] ss:$36 sps:$4 sm:$0xff]   ;;  %v4398_v56 = vld [vmem:[#allocation5 + $0x138] ss:$36 sps:$4 sm:$0xff]   ;;  %v4404_v61 = vld [vmem:[#allocation5 + $0x180] ss:$36 sps:$4 sm:$0xff]  }
  0x82   :  { %658 = vmatprep.subr.bf16.mxu0 %v4346_v20  ;;  %739 = vmatprep.subr.bf16.mxu1 %v4349_v22  ;;  %v4395_v58 = vld [vmem:[#allocation5 + $0x178] ss:$36 sps:$4 sm:$0xff]   ;;  %v4410_v62 = vld [vmem:[#allocation5 + $0x1cc] ss:$36 sps:$4 sm:$0xff]   ;;  %v4401_v63 = vld [vmem:[#allocation5 + $0x1c0] ss:$36 sps:$4 sm:$0xff]  }
  0x83   :  { %v4909_v59 = vld [vmem:[#allocation2 + $0x18] sm:$0xff]   ;;  %v4413_v1 = vld [vmem:[#allocation5 + $0x20c] ss:$36 sps:$4 sm:$0xff]   ;;  %v4915_v5 = vld [vmem:[#allocation2 + $0x20] ss:$0 sps:$4 sm:$0xff]   ;;  %s4755_s19 = smov [#allocation13]  }
  0x84   :  { %v4408_v2 = vld [vmem:[#allocation5 + $0x1c8] ss:$36 sps:$4 sm:$0xff]   ;;  %v4416_v3 = vld [vmem:[#allocation5 + $0x214] ss:$36 sps:$4 sm:$0xff]   ;;  %v4417_v9 = vld [vmem:[#allocation5 + $0x20] ss:$36 sps:$4 sm:$0xff]  }
  0x85   :  { %659 = vmatpush1.bf16.msra.mxu0 %v4348_v23  ;;  %740 = vmatpush1.bf16.msra.mxu1 %v4351_v25  ;;  %v4411_v4 = vld [vmem:[#allocation5 + $0x208] ss:$36 sps:$4 sm:$0xff]   ;;  %v4414_v6 = vld [vmem:[#allocation5 + $0x210] ss:$36 sps:$4 sm:$0xff]   ;;  %v4429_v15 = vld [vmem:[#allocation8 + $0x50] sm:$0xff]   ;;  %s3588_s20 = sshll.u32 %s4755_s19, 4  ;;  %s3589_s20 = int_to_ptr.vmem [resolvable:$true] %s3588_s20 }
  0x86   :  { %660 = vmatprep.subr.bf16.mxu0 %v4352_v24  ;;  %741 = vmatprep.subr.bf16.mxu1 %v4355_v26  ;;  %v4425_v7 = vld [vmem:[#allocation8 + $0x40] sm:$0xff]   ;;  %v4427_v11 = vld [vmem:[#allocation8 + $0x48] sm:$0xff]   ;;  %v4431_v16 = vld [vmem:[#allocation8 + $0x10] sm:$0xff]   ;;  %s4709_s21 = scalar_lea.vmem %s3589_s20, 128  ;;  %p4714_p7 = scmp.lt.s32.totalorder %s3589_s20, %s3589_s20 }
  0x87   :  { %v4426_v10 = vld [vmem:[#allocation8] sm:$0xff]   ;;  %v4428_v14 = vld [vmem:[#allocation8 + $0x8] sm:$0xff]   ;;  %v4434_v17 = vld [vmem:[#allocation8 + $0x58] sm:$0xff]   ;;  %p4710_p6 = scmp.ne.s32.totalorder %s3589_s20, %s4709_s21  ;;  %p4715_p8 = scmp.lt.s32.totalorder %s4709_s21, %s4709_s21 }
  0x88   :  { %v4418_v12 = vld [vmem:[#allocation5 + $0x68] ss:$36 sps:$4 sm:$0xff]   ;;  %v4419_v13 = vld [vmem:[#allocation5 + $0xb0] ss:$36 sps:$4 sm:$0xff]   ;;  %v4420_v18 = vld [vmem:[#allocation5 + $0xf8] ss:$36 sps:$4 sm:$0xff]  }
  0x89   :  { %661 = vmatpush1.bf16.msra.mxu0 %v4354_v27  ;;  %742 = vmatpush1.bf16.msra.mxu1 %v4357_v29  ;;  %v4436_v19 = vld [vmem:[#allocation8 + $0x18] sm:$0xff]   ;;  %v4439_v20 = vld [vmem:[#allocation8 + $0x60] sm:$0xff]   ;;  %v4443_v23 = vld [vmem:[#allocation8 + $0x68] sm:$0xff]   ;;  %p4716_p9 = por %p4715_p8, %p4714_p7 }
  0x8a   :  { %662 = vmatprep.subr.bf16.mxu0 %v4358_v28  ;;  %743 = vmatprep.subr.bf16.mxu1 %v4361_v30  ;;  %v4421_v21 = vld [vmem:[#allocation5 + $0x140] ss:$36 sps:$4 sm:$0xff]   ;;  %v4440_v22 = vld [vmem:[#allocation8 + $0x20] sm:$0xff]   ;;  %v4444_v25 = vld [vmem:[#allocation8 + $0x28] sm:$0xff]  }
  0x8b   :  { %v4422_v24 = vld [vmem:[#allocation5 + $0x188] ss:$36 sps:$4 sm:$0xff]   ;;  %v4423_v26 = vld [vmem:[#allocation5 + $0x1d0] ss:$36 sps:$4 sm:$0xff]   ;;  %v4424_v27 = vld [vmem:[#allocation5 + $0x218] ss:$36 sps:$4 sm:$0xff]   ;;  %p4717_p10 = pnand %p4716_p9, %p4710_p6 }
  0x8c   :  { %v4430_v28 = vld [vmem:[#allocation8 + $0xc0] sm:$0xff]   ;;  %v4433_v30 = vld [vmem:[#allocation8 + $0xc8] sm:$0xff]  }
  0x8d   :  { %663 = vmatpush1.bf16.msra.mxu0 %v4360_v31  ;;  %744 = vmatpush1.bf16.msra.mxu1 %v4363_v33  ;;  %v4432_v29 = vld [vmem:[#allocation8 + $0x80] sm:$0xff]   ;;  %v4435_v31 = vld [vmem:[#allocation8 + $0x88] sm:$0xff]   ;;  %v4447_v33 = vld [vmem:[#allocation8 + $0x70] sm:$0xff]  }
  0x8e   :  { %810 = vmatprep.subr.bf16.mxu0 %v4367_v32  ;;  %891 = vmatprep.subr.bf16.mxu1 %v4377_v35  ;;  %v4438_v32 = vld [vmem:[#allocation8 + $0x90] sm:$0xff]  }
  0x8f   :  { %v4449_v35 = vld [vmem:[#allocation8 + $0x30] sm:$0xff]  }
  0x90   :  { %681 = vmatmul.mubr.bf16.vlgmr.msra.gmra.mrb[0].mxu0 %v4892_v34  ;;  %762 = vmatmul.mubr.bf16.vlgmr.msra.gmra.mrb[0].mxu1 %v4892_v34 }
  0x91   :  { %811 = vmatpush1.bf16.msra.mxu0 %v4365_v36  ;;  %690 = vmatprep.mubr.bf16.mxu0 %v4751_v0  ;;  %v4441_v36 = vld [vmem:[#allocation8 + $0xd8] sm:$0xff]  }
  0x92   :  { %812 = vmatprep.subr.bf16.mxu0 %v4370_v37  ;;  %771 = vmatprep.mubr.bf16.mxu1 %v4751_v0  ;;  %v4442_v37 = vld [vmem:[#allocation8 + $0x98] sm:$0xff]  }
  0x93   :  { %892 = vmatpush1.bf16.msra.mxu1 %v4375_v38  ;;  %v4452_v38 = vld [vmem:[#allocation8 + $0x78] sm:$0xff]  }
  0x94   :  { %893 = vmatprep.subr.bf16.mxu1 %v4380_v39  ;;  %v4445_v39 = vld [vmem:[#allocation8 + $0xe0] sm:$0xff]  }
  0x95   :  { %813 = vmatpush1.bf16.msra.mxu0 %v4368_v40  ;;  %v4446_v40 = vld [vmem:[#allocation8 + $0xa0] sm:$0xff]  }
  0x96   :  { %814 = vmatprep.subr.bf16.mxu0 %v4374_v41  ;;  %v4448_v41 = vld [vmem:[#allocation8 + $0xe8] sm:$0xff]  }
  0x97   :  { %894 = vmatpush1.bf16.msra.mxu1 %v4378_v42  ;;  %v4450_v42 = vld [vmem:[#allocation8 + $0xa8] sm:$0xff]  }
  0x98   :  { %691 = vmatmul.mubr.bf16.gmra.mrb[4].mxu0 %v4898_v43  ;;  %895 = vmatprep.subr.bf16.mxu1 %v4387_v44  ;;  %v4451_v44 = vld [vmem:[#allocation8 + $0xf0] sm:$0xff]  }
  0x99   :  { %815 = vmatpush1.bf16.msra.mxu0 %v4372_v45  ;;  %700 = vmatprep.mubr.bf16.mxu0 %v4751_v0  ;;  %v4453_v45 = vld [vmem:[#allocation8 + $0xb0] sm:$0xff]  }
  0x9a   :  { %772 = vmatmul.mubr.bf16.gmra.mrb[4].mxu1 %v4898_v43  ;;  %816 = vmatprep.subr.bf16.mxu0 %v4383_v46  ;;  %v4455_v46 = vld [vmem:[#allocation8 + $0xf8] sm:$0xff]  }
  0x9b   :  { %781 = vmatprep.mubr.bf16.mxu1 %v4751_v0  ;;  %896 = vmatpush1.bf16.msra.mxu1 %v4385_v47  ;;  %v4456_v47 = vld [vmem:[#allocation8 + $0xb8] sm:$0xff]  }
  0x9c   :  { %897 = vmatprep.subr.bf16.mxu1 %v4393_v48  ;;  %v4462_v48 = vld [vmem:[#allocation8 + $0x1c0] sm:$0xff]  }
  0x9d   :  { %817 = vmatpush1.bf16.msra.mxu0 %v4381_v49  ;;  %v207_v49 = vlaneseq }
  0x9e   :  { %818 = vmatprep.subr.bf16.mxu0 %v4390_v50 }
  0x9f   :  { %898 = vmatpush1.bf16.msra.mxu1 %v4391_v52  ;;  %v4963_v50 = vshrl.u32 %v207_v49, 7  ;;  %v4966_v52 = vld [vmem:[#allocation7] sm:$0xff] }
  0xa0   :  { %701 = vmatmul.mubr.bf16.gmra.mrb[8].mxu0 %v4903_v51  ;;  %899 = vmatprep.subr.bf16.mxu1 %v4400_v53 }
  0xa1   :  { %819 = vmatpush1.bf16.msra.mxu0 %v4388_v54  ;;  %710 = vmatprep.mubr.bf16.mxu0 %v4751_v0  ;;  %v213_v53 = vsub.s32 1, %v4963_v50  ;;  %v217_v54 = vsub.s32 2, %v4963_v50 }
  0xa2   :  { %782 = vmatmul.mubr.bf16.gmra.mrb[8].mxu1 %v4903_v51  ;;  %820 = vmatprep.subr.bf16.mxu0 %v4397_v55  ;;  %v221_v55 = vsub.s32 3, %v4963_v50 }
  0xa3   :  { %791 = vmatprep.mubr.bf16.mxu1 %v4751_v0  ;;  %900 = vmatpush1.bf16.msra.mxu1 %v4398_v56 }
  0xa4   :  { %901 = vmatprep.subr.bf16.mxu1 %v4406_v57  ;;  %v4975_v57 = vrot.slane %v4966_v52, %v213_v53 }
  0xa5   :  { %821 = vmatpush1.bf16.msra.mxu0 %v4395_v58  ;;  %v4978_v58 = vrot.slane %v4966_v52, %v217_v54 }
  0xa6   :  { %822 = vmatprep.subr.bf16.mxu0 %v4403_v60  ;;  %v4981_v60 = vrot.slane %v4966_v52, %v221_v55  ;;  %v4467_v55 = vld [vmem:[#allocation8 + $0x188] sm:$0xff]  }
  0xa7   :  { %902 = vmatpush1.bf16.msra.mxu1 %v4404_v61 }
  0xa8   :  { %711 = vmatmul.mubr.bf16.gmra.mrb[12].mxu0 %v4909_v59  ;;  %903 = vmatprep.subr.bf16.mxu1 %v4410_v62 }
  0xa9   :  { %720 = vmatprep.mubr.bf16.mxu0 %v4751_v0  ;;  %823 = vmatpush1.bf16.msra.mxu0 %v4401_v63 }
  0xaa   :  { %792 = vmatmul.mubr.bf16.gmra.mrb[12].mxu1 %v4909_v59  ;;  %824 = vmatprep.subr.bf16.mxu0 %v4413_v1 }
  0xab   :  { %801 = vmatprep.mubr.bf16.mxu1 %v4751_v0  ;;  %904 = vmatpush1.bf16.msra.mxu1 %v4408_v2 }
  0xac   :  { %905 = vmatprep.subr.bf16.mxu1 %v4416_v3 }
  0xad   :  { %825 = vmatpush1.bf16.msra.mxu0 %v4411_v4 }
  0xae   :  { %4189 = vmatprep.subr.bf16.mxu0 %v4752_v8 }
  0xaf   :  { %906 = vmatpush1.bf16.msra.mxu1 %v4414_v6 }
  0xb0   :  { %721 = vmatmul.mubr.bf16.gmra.mrb[16].mxu0 %v4915_v5  ;;  %3886 = vmatprep.subr.bf16.mxu1 %v4425_v7 }
  0xb1   :  { %842 = vmatprep.mubr.bf16.mxu0 %v4751_v0 }
  0xb2   :  { %802 = vmatmul.mubr.bf16.gmra.mrb[16].mxu1 %v4915_v5 }
  0xb3   :  { %923 = vmatprep.mubr.bf16.mxu1 %v4751_v0 }
  0xb8   :  { %843 = vmatmul.mubr.bf16.vlgmr.msra.gmra.mrb[20].mxu0 %v4892_v34 }
  0xb9   :  { %4190 = vmatpush3.bf16.msra.mxu0 %v4417_v9  ;;  %852 = vmatprep.mubr.bf16.mxu0 %v4751_v0 }
  0xba   :  { %924 = vmatmul.mubr.bf16.vlgmr.msra.gmra.mrb[20].mxu1 %v4892_v34  ;;  %4191 = vmatprep.subr.bf16.mxu0 %v4752_v8 }
  0xbb   :  { %933 = vmatprep.mubr.bf16.mxu1 %v4751_v0  ;;  %3887 = vmatpush3.bf16.msra.mxu1 %v4426_v10 }
  0xbc   :  { %3888 = vmatprep.subr.bf16.mxu1 %v4427_v11 }
  0xbd   :  { %4192 = vmatpush3.bf16.msra.mxu0 %v4418_v12 }
  0xbe   :  { %4193 = vmatprep.subr.bf16.mxu0 %v4752_v8 }
  0xbf   :  { %3889 = vmatpush3.bf16.msra.mxu1 %v4428_v14 }
  0xc0   :  { %853 = vmatmul.mubr.bf16.gmra.mrb[24].mxu0 %v4898_v43  ;;  %3890 = vmatprep.subr.bf16.mxu1 %v4429_v15 }
  0xc1   :  { %4194 = vmatpush3.bf16.msra.mxu0 %v4419_v13  ;;  %862 = vmatprep.mubr.bf16.mxu0 %v4751_v0 }
  0xc2   :  { %934 = vmatmul.mubr.bf16.gmra.mrb[24].mxu1 %v4898_v43  ;;  %4195 = vmatprep.subr.bf16.mxu0 %v4752_v8 }
  0xc3   :  { %943 = vmatprep.mubr.bf16.mxu1 %v4751_v0  ;;  %3891 = vmatpush3.bf16.msra.mxu1 %v4431_v16 }
  0xc4   :  { %3892 = vmatprep.subr.bf16.mxu1 %v4434_v17 }
  0xc5   :  { %4196 = vmatpush3.bf16.msra.mxu0 %v4420_v18 }
  0xc6   :  { %4197 = vmatprep.subr.bf16.mxu0 %v4752_v8 }
  0xc7   :  { %3893 = vmatpush3.bf16.msra.mxu1 %v4436_v19 }
  0xc8   :  { %863 = vmatmul.mubr.bf16.gmra.mrb[28].mxu0 %v4903_v51  ;;  %3894 = vmatprep.subr.bf16.mxu1 %v4439_v20 }
  0xc9   :  { %872 = vmatprep.mubr.bf16.mxu0 %v4751_v0  ;;  %4198 = vmatpush3.bf16.msra.mxu0 %v4421_v21 }
  0xca   :  { %944 = vmatmul.mubr.bf16.gmra.mrb[28].mxu1 %v4903_v51  ;;  %4199 = vmatprep.subr.bf16.mxu0 %v4752_v8 }
  0xcb   :  { %953 = vmatprep.mubr.bf16.mxu1 %v4751_v0  ;;  %3895 = vmatpush3.bf16.msra.mxu1 %v4440_v22 }
  0xcc   :  { %3896 = vmatprep.subr.bf16.mxu1 %v4443_v23 }
  0xcd   :  { %4200 = vmatpush3.bf16.msra.mxu0 %v4422_v24 }
  0xce   :  { %4201 = vmatprep.subr.bf16.mxu0 %v4752_v8 }
  0xcf   :  { %3897 = vmatpush3.bf16.msra.mxu1 %v4444_v25  ;;  %v4458_v25 = vld [vmem:[#allocation8 + $0x100] sm:$0xff]  }
  0xd0   :  { %873 = vmatmul.mubr.bf16.gmra.mrb[32].mxu0 %v4909_v59  ;;  %3898 = vmatprep.subr.bf16.mxu1 %v4447_v33  ;;  %v4464_v33 = vld [vmem:[#allocation8 + $0x180] sm:$0xff]  }
  0xd1   :  { %882 = vmatprep.mubr.bf16.mxu0 %v4751_v0  ;;  %4202 = vmatpush3.bf16.msra.mxu0 %v4423_v26 }
  0xd2   :  { %954 = vmatmul.mubr.bf16.gmra.mrb[32].mxu1 %v4909_v59  ;;  %4203 = vmatprep.subr.bf16.mxu0 %v4752_v8 }
  0xd3   :  { %963 = vmatprep.mubr.bf16.mxu1 %v4751_v0  ;;  %v4437_v0 = vld [vmem:[#allocation8 + $0xd0] sm:$0xff]   ;;  %3899 = vmatpush3.bf16.msra.mxu1 %v4449_v35 }
  0xd4   :  { %3900 = vmatprep.subr.bf16.mxu1 %v4452_v38 }
  0xd5   :  { %4204 = vmatpush3.bf16.msra.mxu0 %v4424_v27 }
  0xd6   :  { %3932 = vmatprep.subr.bf16.mxu0 %v4430_v28 }
  0xd8   :  { %883 = vmatmul.mubr.bf16.gmra.mrb[36].mxu0 %v4915_v5 }
  0xd9   :  { %4205 = vmatprep.mubr.msk.bf16.mxu0 %vm4753_vm0, %v4752_v8 }
  0xda   :  { %964 = vmatmul.mubr.bf16.gmra.mrb[36].mxu1 %v4915_v5 }
  0xe0   :  { %4206 = vmatmul.mubr.bf16.vlgmr.msra.gmra.mrb[40].mxu0 %v4892_v34  ;;  %v4454_v34 = vld [vmem:[#allocation8 + $0x38] sm:$0xff]  }
  0xe1   :  { %4209 = vmatprep.mubr.msk.bf16.mxu0 %vm4753_vm0, %v4752_v8  ;;  %3933 = vmatpush3.bf16.msra.mxu0 %v4432_v29  ;;  %v4459_v29 = vld [vmem:[#allocation8 + $0x148] sm:$0xff]  }
  0xe2   :  { %3934 = vmatprep.subr.bf16.mxu0 %v4433_v30  ;;  %3901 = vmatpush3.bf16.msra.mxu1 %v4454_v34  ;;  %v4465_v34 = vld [vmem:[#allocation8 + $0x1c8] sm:$0xff]  }
  0xe5   :  { %3935 = vmatpush3.bf16.msra.mxu0 %v4435_v31 }
  0xe6   :  { %3936 = vmatprep.subr.bf16.mxu0 %v4437_v0 }
  0xe8   :  { %4210 = vmatmul.mubr.bf16.gmra.mrb[44].mxu0 %v4898_v43  ;;  %v4457_v43 = vld [vmem:[#allocation8 + $0x140] sm:$0xff]  }
  0xe9   :  { %4213 = vmatprep.mubr.msk.bf16.mxu0 %vm4753_vm0, %v4752_v8  ;;  %3937 = vmatpush3.bf16.msra.mxu0 %v4438_v32 }
  0xea   :  { %3938 = vmatprep.subr.bf16.mxu0 %v4441_v36  ;;  %3978 = vmatprep.subr.bf16.mxu1 %v4457_v43 }
  0xed   :  { %3939 = vmatpush3.bf16.msra.mxu0 %v4442_v37 }
  0xee   :  { %3940 = vmatprep.subr.bf16.mxu0 %v4445_v39 }
  0xf0   :  { %4214 = vmatmul.mubr.bf16.gmra.mrb[48].mxu0 %v4903_v51  ;;  %v209_v51 = vsub.s32 0, %v4963_v50 }
  0xf1   :  { %4217 = vmatprep.mubr.msk.bf16.mxu0 %vm4753_vm0, %v4752_v8  ;;  %3941 = vmatpush3.bf16.msra.mxu0 %v4446_v40 }
  0xf2   :  { %3942 = vmatprep.subr.bf16.mxu0 %v4448_v41  ;;  %v4972_v56 = vrot.slane %v4966_v52, %v209_v51 }
  0xf5   :  { %3943 = vmatpush3.bf16.msra.mxu0 %v4450_v42  ;;  %v4460_v42 = vld [vmem:[#allocation8 + $0x108] sm:$0xff]  }
  0xf6   :  { %3944 = vmatprep.subr.bf16.mxu0 %v4451_v44 }
  0xf8   :  { %4218 = vmatmul.mubr.bf16.gmra.mrb[52].mxu0 %v4909_v59 }
  0xf9   :  { %4221 = vmatprep.mubr.msk.bf16.mxu0 %vm4753_vm0, %v4752_v8  ;;  %3945 = vmatpush3.bf16.msra.mxu0 %v4453_v45 }
  0xfa   :  { %3946 = vmatprep.subr.bf16.mxu0 %v4455_v46 }
  0xfd   :  { %3947 = vmatpush3.bf16.msra.mxu0 %v4456_v47 }
  0xfe   :  { %4024 = vmatprep.subr.bf16.mxu0 %v4462_v48  ;;  %v4461_v48 = vld [vmem:[#allocation8 + $0x150] sm:$0xff]  }
 0x100   :  { %4222 = vmatmul.mubr.bf16.gmra.mrb[56].mxu0 %v4915_v5 }
 0x163   :  { %v682_v59 = vpop.f32.mrb[0].mxu0  ;;  %v763_v2 = vpop.f32.mrb[0].mxu1 }
 0x164   :  { %v683_v61 = vadd.f32 %v682_v59, %v4972_v56  ;;  %v684_v62 = vpop.f32.mrb[1].mxu0  ;;  %v764_v4 = vadd.f32 %v763_v2, %v4978_v58  ;;  %v765_v6 = vpop.f32.mrb[1].mxu1 }
 0x165   :  { %v685_v63 = vadd.f32 %v684_v62, %v4975_v57  ;;  %v686_v1 = vpop.f32.mrb[2].mxu0  ;;  %v766_v9 = vadd.f32 %v765_v6, %v4981_v60  ;;  %v767_v10 = vpop.f32.mrb[2].mxu1  ;;  %v4469_v62 = vld [vmem:[#allocation8 + $0x1d0] sm:$0xff]  }
 0x166   :  { %v687_v3 = vadd.f32 %v686_v1, %v4972_v56  ;;  %v688_v5 = vpop.f32.mrb[3].mxu0  ;;  %v1044_v11 = vmax.f32 %v683_v61, 0.0  ;;  %v1046_v13 = vmax.f32 %v764_v4, 0.0  ;;  %v768_v14 = vadd.f32 %v767_v10, %v4978_v58  ;;  %v769_v15 = vpop.f32.mrb[3].mxu1 }
 0x167   :  { %v689_v7 = vadd.f32 %v688_v5, %v4975_v57  ;;  %v1045_v16 = vmax.f32 %v685_v63, 0.0  ;;  %v1047_v18 = vmax.f32 %v766_v9, 0.0  ;;  %v770_v19 = vadd.f32 %v769_v15, %v4981_v60 }
 0x168   :  { %v1053_v12 = vmax.f32 %v687_v3, 0.0  ;;  %v1055_v21 = vmax.f32 %v768_v14, 0.0  ;;  %v4463_v3 = vld [vmem:[#allocation8 + $0x110] sm:$0xff]  }
 0x169   :  { %v1054_v17 = vmax.f32 %v689_v7, 0.0  ;;  %v1056_v23 = vmax.f32 %v770_v19, 0.0  ;;  %v4466_v7 = vld [vmem:[#allocation8 + $0x158] sm:$0xff]  }
 0x16a   :  { %v1125_v20 = vpack.c.bf16 %v1053_v12, %v1044_v11  ;;  %v1127_v26 = vpack.c.bf16 %v1055_v21, %v1046_v13  ;;  %v4470_v13 = vld [vmem:[#allocation8 + $0x190] sm:$0xff]  }
 0x16b   :  { %v1126_v22 = vpack.c.bf16 %v1054_v17, %v1045_v16  ;;  %v692_v24 = vpop.f32.mrb[4].mxu0  ;;  %v1128_v30 = vpack.c.bf16 %v1056_v23, %v1047_v18  ;;  %v4473_v18 = vld [vmem:[#allocation8 + $0x1d8] sm:$0xff]  }
 0x16c   :  { %v693_v27 = vadd.f32 %v692_v24, %v4972_v56  ;;  %v694_v28 = vpop.f32.mrb[5].mxu0 }
 0x16d   :  { %v695_v31 = vadd.f32 %v694_v28, %v4975_v57  ;;  %v696_v0 = vpop.f32.mrb[6].mxu0  ;;  %v773_v32 = vpop.f32.mrb[4].mxu1  ;;  %1785 = vmatprep.mubr.bf16.mxu1 %v1126_v22  ;;  %1857 = vmatprep.mubr.bf16.mxu0 %v1128_v30  ;;  %v4468_v22 = vld [vmem:[#allocation8 + $0x118] sm:$0xff]   ;;  %v4471_v28 = vld [vmem:[#allocation8 + $0x160] sm:$0xff]  }
 0x16e   :  { %v697_v35 = vadd.f32 %v696_v0, %v4972_v56  ;;  %v774_v36 = vadd.f32 %v773_v32, %v4978_v58  ;;  %v698_v37 = vpop.f32.mrb[7].mxu0  ;;  %v775_v38 = vpop.f32.mrb[5].mxu1  ;;  %1786 = vmatmul.mubr.bf16.vlgmr.msra.gmra.mrb[40].mxu1 %v1125_v20  ;;  %v1062_v44 = vmax.f32 %v693_v27, 0.0  ;;  %1858 = vmatmul.mubr.bf16.vlgmr.msra.gmra.mrb[60].mxu0 %v1127_v26  ;;  %v4474_v32 = vld [vmem:[#allocation8 + $0x198] sm:$0xff]  }
 0x16f   :  { %v699_v39 = vadd.f32 %v698_v37, %v4975_v57  ;;  %v776_v40 = vadd.f32 %v775_v38, %v4981_v60  ;;  %v777_v41 = vpop.f32.mrb[6].mxu1  ;;  %3979 = vmatpush3.bf16.msra.mxu1 %v4458_v25  ;;  %v1063_v49 = vmax.f32 %v695_v31, 0.0  ;;  %4025 = vmatpush3.bf16.msra.mxu0 %v4464_v33 }
 0x170   :  { %v1071_v43 = vmax.f32 %v697_v35, 0.0  ;;  %v1064_v45 = vmax.f32 %v774_v36, 0.0  ;;  %v778_v46 = vadd.f32 %v777_v41, %v4978_v58  ;;  %v779_v47 = vpop.f32.mrb[7].mxu1  ;;  %3980 = vmatprep.subr.bf16.mxu1 %v4459_v29  ;;  %4026 = vmatprep.subr.bf16.mxu0 %v4465_v34  ;;  %v4477_v36 = vld [vmem:[#allocation8 + $0x1e0] sm:$0xff]  }
 0x171   :  { %v1072_v51 = vmax.f32 %v699_v39, 0.0  ;;  %v1065_v53 = vmax.f32 %v776_v40, 0.0  ;;  %v780_v54 = vadd.f32 %v779_v47, %v4981_v60  ;;  %v4472_v39 = vld [vmem:[#allocation8 + $0x120] sm:$0xff]  }
 0x172   :  { %v1134_v59 = vpack.c.bf16 %v1071_v43, %v1062_v44  ;;  %v1073_v61 = vmax.f32 %v778_v46, 0.0  ;;  %v4475_v44 = vld [vmem:[#allocation8 + $0x168] sm:$0xff]  }
 0x173   :  { %v1135_v63 = vpack.c.bf16 %v1072_v51, %v1063_v49  ;;  %v1074_v1 = vmax.f32 %v780_v54, 0.0  ;;  %v702_v2 = vpop.f32.mrb[8].mxu0  ;;  %3981 = vmatpush3.bf16.msra.mxu1 %v4460_v42  ;;  %4027 = vmatpush3.bf16.msra.mxu0 %v4467_v55  ;;  %v4480_v55 = vld [vmem:[#allocation8 + $0x1e8] sm:$0xff]  }
 0x174   :  { %v1136_v4 = vpack.c.bf16 %v1073_v61, %v1064_v45  ;;  %v703_v5 = vadd.f32 %v702_v2, %v4972_v56  ;;  %v704_v6 = vpop.f32.mrb[9].mxu0  ;;  %3982 = vmatprep.subr.bf16.mxu1 %v4461_v48  ;;  %4028 = vmatprep.subr.bf16.mxu0 %v4469_v62  ;;  %v4478_v48 = vld [vmem:[#allocation8 + $0x1a0] sm:$0xff]  }
 0x175   :  { %v1137_v9 = vpack.c.bf16 %v1074_v1, %v1065_v53  ;;  %v705_v10 = vadd.f32 %v704_v6, %v4975_v57  ;;  %v706_v11 = vpop.f32.mrb[10].mxu0  ;;  %v783_v12 = vpop.f32.mrb[8].mxu1  ;;  %1793 = vmatprep.mubr.bf16.mxu1 %v1135_v63  ;;  %v4476_v63 = vld [vmem:[#allocation8 + $0x128] sm:$0xff]   ;;  %v4479_v6 = vld [vmem:[#allocation8 + $0x170] sm:$0xff]  }
 0x176   :  { %v707_v14 = vadd.f32 %v706_v11, %v4972_v56  ;;  %v784_v15 = vadd.f32 %v783_v12, %v4978_v58  ;;  %v708_v16 = vpop.f32.mrb[11].mxu0  ;;  %v785_v17 = vpop.f32.mrb[9].mxu1  ;;  %1794 = vmatmul.mubr.bf16.gmra.mrb[44].mxu1 %v1134_v59  ;;  %v1080_v23 = vmax.f32 %v703_v5, 0.0  ;;  %v4482_v12 = vld [vmem:[#allocation8 + $0x1a8] sm:$0xff]  }
 0x177   :  { %v709_v19 = vadd.f32 %v708_v16, %v4975_v57  ;;  %v786_v20 = vadd.f32 %v785_v17, %v4981_v60  ;;  %v787_v21 = vpop.f32.mrb[10].mxu1  ;;  %1865 = vmatprep.mubr.bf16.mxu0 %v1137_v9  ;;  %3983 = vmatpush3.bf16.msra.mxu1 %v4463_v3  ;;  %v1081_v29 = vmax.f32 %v705_v10, 0.0 }
 0x178   :  { %v1089_v24 = vmax.f32 %v707_v14, 0.0  ;;  %v1082_v25 = vmax.f32 %v784_v15, 0.0  ;;  %v788_v26 = vadd.f32 %v787_v21, %v4978_v58  ;;  %v789_v27 = vpop.f32.mrb[11].mxu1  ;;  %1866 = vmatmul.mubr.bf16.gmra.mrb[64].mxu0 %v1136_v4  ;;  %3984 = vmatprep.subr.bf16.mxu1 %v4466_v7  ;;  %v4483_v15 = vld [vmem:[#allocation8 + $0x1f0] sm:$0xff]  }
 0x179   :  { %v1090_v30 = vmax.f32 %v709_v19, 0.0  ;;  %v1083_v31 = vmax.f32 %v786_v20, 0.0  ;;  %v790_v0 = vadd.f32 %v789_v27, %v4981_v60  ;;  %4029 = vmatpush3.bf16.msra.mxu0 %v4470_v13  ;;  %v4481_v19 = vld [vmem:[#allocation8 + $0x130] sm:$0xff]  }
 0x17a   :  { %v1143_v33 = vpack.c.bf16 %v1089_v24, %v1080_v23  ;;  %v1091_v35 = vmax.f32 %v788_v26, 0.0  ;;  %4030 = vmatprep.subr.bf16.mxu0 %v4473_v18  ;;  %v225_v23 = vsub.s32 4, %v4963_v50  ;;  %v4484_v24 = vld [vmem:[#allocation8 + $0x178] sm:$0xff]  }
 0x17b   :  { %v1144_v37 = vpack.c.bf16 %v1090_v30, %v1081_v29  ;;  %v1092_v38 = vmax.f32 %v790_v0, 0.0  ;;  %v712_v34 = vpop.f32.mrb[12].mxu0  ;;  %3985 = vmatpush3.bf16.msra.mxu1 %v4468_v22  ;;  %v229_v29 = vsub.s32 5, %v4963_v50  ;;  %v4485_v30 = vld [vmem:[#allocation8 + $0x1b0] sm:$0xff]  }
 0x17c   :  { %v1145_v40 = vpack.c.bf16 %v1091_v35, %v1082_v25  ;;  %v713_v41 = vadd.f32 %v712_v34, %v4972_v56  ;;  %v714_v42 = vpop.f32.mrb[13].mxu0  ;;  %3986 = vmatprep.subr.bf16.mxu1 %v4471_v28 }
 0x17d   :  { %v1146_v43 = vpack.c.bf16 %v1092_v38, %v1083_v31  ;;  %v715_v45 = vadd.f32 %v714_v42, %v4975_v57  ;;  %v716_v46 = vpop.f32.mrb[14].mxu0  ;;  %v793_v47 = vpop.f32.mrb[12].mxu1  ;;  %1801 = vmatprep.mubr.bf16.mxu1 %v1144_v37  ;;  %4031 = vmatpush3.bf16.msra.mxu0 %v4474_v32  ;;  %v233_v32 = vsub.s32 6, %v4963_v50  ;;  %v237_v37 = vsub.s32 7, %v4963_v50  ;;  %v4486_v38 = vld [vmem:[#allocation8 + $0x138] sm:$0xff]  }
 0x17e   :  { %v717_v49 = vadd.f32 %v716_v46, %v4972_v56  ;;  %v794_v51 = vadd.f32 %v793_v47, %v4978_v58  ;;  %v718_v53 = vpop.f32.mrb[15].mxu0  ;;  %v795_v54 = vpop.f32.mrb[13].mxu1  ;;  %1802 = vmatmul.mubr.bf16.gmra.mrb[48].mxu1 %v1143_v33  ;;  %4032 = vmatprep.subr.bf16.mxu0 %v4477_v36  ;;  %v1098_v1 = vmax.f32 %v713_v41, 0.0  ;;  %v4487_v33 = vld [vmem:[#allocation8 + $0x1f8] sm:$0xff]  }
 0x17f   :  { %v719_v59 = vadd.f32 %v718_v53, %v4975_v57  ;;  %v796_v61 = vadd.f32 %v795_v54, %v4981_v60  ;;  %v797_v62 = vpop.f32.mrb[14].mxu1  ;;  %1873 = vmatprep.mubr.bf16.mxu0 %v1146_v43  ;;  %3987 = vmatpush3.bf16.msra.mxu1 %v4472_v39  ;;  %v1099_v7 = vmax.f32 %v715_v45, 0.0  ;;  %v5030_v43 = vrot.slane %v4966_v52, %v233_v32  ;;  %v4490_v32 = vld [vmem:[#allocation8 + $0x208] sm:$0xff]  }
 0x180   :  { %v1107_v2 = vmax.f32 %v717_v49, 0.0  ;;  %v1100_v3 = vmax.f32 %v794_v51, 0.0  ;;  %v798_v4 = vadd.f32 %v797_v62, %v4978_v58  ;;  %v799_v5 = vpop.f32.mrb[15].mxu1  ;;  %1874 = vmatmul.mubr.bf16.gmra.mrb[68].mxu0 %v1145_v40  ;;  %3988 = vmatprep.subr.bf16.mxu1 %v4475_v44  ;;  %v5024_v40 = vrot.slane %v4966_v52, %v225_v23 }
 0x181   :  { %v1108_v9 = vmax.f32 %v719_v59, 0.0  ;;  %v1101_v10 = vmax.f32 %v796_v61, 0.0  ;;  %v800_v11 = vadd.f32 %v799_v5, %v4981_v60  ;;  %4033 = vmatpush3.bf16.msra.mxu0 %v4478_v48  ;;  %v5027_v44 = vrot.slane %v4966_v52, %v229_v29 }
 0x182   :  { %v1152_v13 = vpack.c.bf16 %v1107_v2, %v1098_v1  ;;  %v1109_v14 = vmax.f32 %v798_v4, 0.0  ;;  %4034 = vmatprep.subr.bf16.mxu0 %v4480_v55  ;;  %v5033_v47 = vrot.slane %v4966_v52, %v237_v37 }
 0x183   :  { %v1153_v16 = vpack.c.bf16 %v1108_v9, %v1099_v7  ;;  %v1110_v17 = vmax.f32 %v800_v11, 0.0  ;;  %v722_v18 = vpop.f32.mrb[16].mxu0  ;;  %3989 = vmatpush3.bf16.msra.mxu1 %v4476_v63 }
 0x184   :  { %v1154_v20 = vpack.c.bf16 %v1109_v14, %v1100_v3  ;;  %v723_v21 = vadd.f32 %v722_v18, %v4972_v56  ;;  %v724_v22 = vpop.f32.mrb[17].mxu0  ;;  %3990 = vmatprep.subr.bf16.mxu1 %v4479_v6 }
 0x185   :  { %v1155_v25 = vpack.c.bf16 %v1110_v17, %v1101_v10  ;;  %v725_v26 = vadd.f32 %v724_v22, %v4975_v57  ;;  %v726_v27 = vpop.f32.mrb[18].mxu0  ;;  %1809 = vmatprep.mubr.bf16.mxu1 %v1153_v16  ;;  %v803_v28 = vpop.f32.mrb[16].mxu1  ;;  %4035 = vmatpush3.bf16.msra.mxu0 %v4482_v12 }
 0x186   :  { %v727_v31 = vpop.f32.mrb[19].mxu0  ;;  %1810 = vmatmul.mubr.bf16.gmra.mrb[52].mxu1 %v1152_v13  ;;  %v804_v0 = vadd.f32 %v803_v28, %v4978_v58  ;;  %v805_v56 = vpop.f32.mrb[17].mxu1  ;;  %4036 = vmatprep.subr.bf16.mxu0 %v4483_v15  ;;  %v1116_v34 = vmax.f32 %v723_v21, 0.0 }
 0x187   :  { %v1117_v35 = vmax.f32 %v725_v26, 0.0  ;;  %1881 = vmatprep.mubr.bf16.mxu0 %v1155_v25  ;;  %v806_v57 = vadd.f32 %v805_v56, %v4981_v60  ;;  %v807_v36 = vpop.f32.mrb[18].mxu1  ;;  %3991 = vmatpush3.bf16.msra.mxu1 %v4481_v19  ;;  %v4488_v60 = vld [vmem:[#allocation8 + $0x1b8] sm:$0xff]   ;;  %v4489_v19 = vld [vmem:[#allocation8 + $0x200] sm:$0xff]  }
 0x188   :  { %v1118_v39 = vmax.f32 %v804_v0, 0.0  ;;  %1882 = vmatmul.mubr.bf16.gmra.mrb[72].mxu0 %v1154_v20  ;;  %v808_v58 = vpop.f32.mrb[19].mxu1  ;;  %3992 = vmatprep.subr.bf16.mxu1 %v4484_v24  ;;  %v1161_v48 = vpack.c.bf16 %v1116_v34, %v1116_v34 }
 0x189   :  { %v1162_v41 = vpack.c.bf16 %v1117_v35, %v1117_v35  ;;  %v1119_v42 = vmax.f32 %v806_v57, 0.0  ;;  %4037 = vmatpush3.bf16.msra.mxu0 %v4485_v30 }
 0x18a   :  { %4038 = vmatprep.subr.bf16.mxu0 %v4487_v33  ;;  %v1163_v49 = vpack.c.bf16 %v1118_v39, %v1118_v39 }
 0x18b   :  { %v1164_v45 = vpack.c.bf16 %v1119_v42, %v1119_v42  ;;  %v844_v46 = vpop.f32.mrb[20].mxu0  ;;  %1817 = vmatprep.mubr.bf16.mxu1 %v1162_v41  ;;  %3993 = vmatpush3.bf16.msra.mxu1 %v4486_v38 }
 0x18c   :  { %v845_v51 = vadd.f32 %v844_v46, %v5024_v40  ;;  %v846_v53 = vpop.f32.mrb[21].mxu0  ;;  %4225 = vmatprep.subr.bf16.mxu1 %v4752_v8 }
 0x18d   :  { %v847_v54 = vadd.f32 %v846_v53, %v5027_v44  ;;  %v848_v55 = vpop.f32.mrb[22].mxu0  ;;  %v925_v59 = vpop.f32.mrb[20].mxu1  ;;  %1889 = vmatprep.mubr.bf16.mxu0 %v1164_v45  ;;  %4039 = vmatpush3.bf16.msra.mxu0 %v4488_v60 }
 0x18e   :  { %v849_v61 = vadd.f32 %v848_v55, %v5024_v40  ;;  %v926_v62 = vadd.f32 %v925_v59, %v5030_v43  ;;  %v850_v52 = vpop.f32.mrb[23].mxu0  ;;  %v927_v63 = vpop.f32.mrb[21].mxu1  ;;  %1818 = vmatmul.mubr.bf16.gmra.mrb[56].mxu1 %v1161_v48  ;;  %v1048_v4 = vmax.f32 %v845_v51, 0.0  ;;  %v4491_v48 = vld [vmem:[#allocation8 + $0x210] sm:$0xff]  }
 0x18f   :  { %v851_v1 = vadd.f32 %v850_v52, %v5027_v44  ;;  %v928_v2 = vadd.f32 %v927_v63, %v5033_v47  ;;  %v929_v3 = vpop.f32.mrb[22].mxu1  ;;  %v1049_v10 = vmax.f32 %v847_v54, 0.0 }
 0x190   :  { %v1057_v5 = vmax.f32 %v849_v61, 0.0  ;;  %v1050_v6 = vmax.f32 %v926_v62, 0.0  ;;  %v930_v7 = vadd.f32 %v929_v3, %v5030_v43  ;;  %v931_v9 = vpop.f32.mrb[23].mxu1  ;;  %1890 = vmatmul.mubr.bf16.gmra.mrb[76].mxu0 %v1163_v49 }
 0x191   :  { %v1058_v11 = vmax.f32 %v851_v1, 0.0  ;;  %v1051_v12 = vmax.f32 %v928_v2, 0.0  ;;  %v932_v13 = vadd.f32 %v931_v9, %v5033_v47 }
 0x192   :  { %v1129_v14 = vpack.c.bf16 %v1057_v5, %v1048_v4  ;;  %v1059_v15 = vmax.f32 %v930_v7, 0.0  ;;  %v4492_v5 = vld [vmem:[#allocation8 + $0x218] sm:$0xff]  }
 0x193   :  { %v1130_v16 = vpack.c.bf16 %v1058_v11, %v1049_v10  ;;  %v1060_v17 = vmax.f32 %v932_v13, 0.0  ;;  %v854_v18 = vpop.f32.mrb[24].mxu0 }
 0x194   :  { %v1131_v20 = vpack.c.bf16 %v1059_v15, %v1050_v6  ;;  %v855_v21 = vadd.f32 %v854_v18, %v5024_v40  ;;  %v856_v22 = vpop.f32.mrb[25].mxu0 }
 0x195   :  { %v1132_v23 = vpack.c.bf16 %v1060_v17, %v1051_v12  ;;  %v857_v24 = vadd.f32 %v856_v22, %v5027_v44  ;;  %v858_v25 = vpop.f32.mrb[26].mxu0  ;;  %v935_v26 = vpop.f32.mrb[24].mxu1  ;;  %1929 = vmatprep.mubr.bf16.mxu1 %v1130_v16 }
 0x196   :  { %v859_v27 = vadd.f32 %v858_v25, %v5024_v40  ;;  %v936_v28 = vadd.f32 %v935_v26, %v5030_v43  ;;  %v860_v29 = vpop.f32.mrb[27].mxu0  ;;  %v937_v30 = vpop.f32.mrb[25].mxu1  ;;  %1930 = vmatmul.mubr.bf16.vlgmr.msra.gmra.mrb[60].mxu1 %v1129_v14  ;;  %v1066_v33 = vmax.f32 %v855_v21, 0.0  ;;  %v4493_v21 = vld [vmem:[#allocation8 + $0x220] sm:$0xff]  }
 0x197   :  { %v861_v31 = vadd.f32 %v860_v29, %v5027_v44  ;;  %v938_v0 = vadd.f32 %v937_v30, %v5033_v47  ;;  %v939_v56 = vpop.f32.mrb[26].mxu1  ;;  %2001 = vmatprep.mubr.bf16.mxu0 %v1132_v23  ;;  %4226 = vmatpush3.bf16.msra.mxu1 %v4489_v19  ;;  %v1067_v38 = vmax.f32 %v857_v24, 0.0 }
 0x198   :  { %v1075_v35 = vmax.f32 %v859_v27, 0.0  ;;  %v1068_v57 = vmax.f32 %v936_v28, 0.0  ;;  %v940_v36 = vadd.f32 %v939_v56, %v5030_v43  ;;  %v941_v37 = vpop.f32.mrb[27].mxu1  ;;  %2002 = vmatmul.mubr.bf16.vlgmr.msra.gmra.mrb[80].mxu0 %v1131_v20  ;;  %4227 = vmatprep.subr.bf16.mxu1 %v4752_v8 }
 0x199   :  { %v1076_v34 = vmax.f32 %v861_v31, 0.0  ;;  %v1069_v39 = vmax.f32 %v938_v0, 0.0  ;;  %v942_v58 = vadd.f32 %v941_v37, %v5033_v47 }
 0x19a   :  { %v1138_v41 = vpack.c.bf16 %v1075_v35, %v1066_v33  ;;  %v1077_v42 = vmax.f32 %v940_v36, 0.0  ;;  %v4494_v35 = vld [vmem:[#allocation8 + $0x228] sm:$0xff]  }
 0x19b   :  { %v1139_v60 = vpack.c.bf16 %v1076_v34, %v1067_v38  ;;  %v1078_v45 = vmax.f32 %v942_v58, 0.0  ;;  %v864_v46 = vpop.f32.mrb[28].mxu0  ;;  %4228 = vmatpush3.bf16.msra.mxu1 %v4490_v32 }
 0x19c   :  { %v1140_v49 = vpack.c.bf16 %v1077_v42, %v1068_v57  ;;  %v865_v51 = vadd.f32 %v864_v46, %v5024_v40  ;;  %v866_v53 = vpop.f32.mrb[29].mxu0  ;;  %4229 = vmatprep.subr.bf16.mxu1 %v4752_v8 }
 0x19d   :  { %v1141_v54 = vpack.c.bf16 %v1078_v45, %v1069_v39  ;;  %v867_v55 = vadd.f32 %v866_v53, %v5027_v44  ;;  %v868_v59 = vpop.f32.mrb[30].mxu0  ;;  %v945_v61 = vpop.f32.mrb[28].mxu1  ;;  %1937 = vmatprep.mubr.bf16.mxu1 %v1139_v60 }
 0x19e   :  { %v869_v62 = vadd.f32 %v868_v59, %v5024_v40  ;;  %v946_v52 = vadd.f32 %v945_v61, %v5030_v43  ;;  %v870_v63 = vpop.f32.mrb[31].mxu0  ;;  %v947_v1 = vpop.f32.mrb[29].mxu1  ;;  %1938 = vmatmul.mubr.bf16.gmra.mrb[64].mxu1 %v1138_v41  ;;  %v1084_v6 = vmax.f32 %v865_v51, 0.0  ;;  %v4495_v51 = vld [vmem:[#allocation8 + $0x230] sm:$0xff]  }
 0x19f   :  { %v871_v2 = vadd.f32 %v870_v63, %v5027_v44  ;;  %v948_v3 = vadd.f32 %v947_v1, %v5033_v47  ;;  %v949_v4 = vpop.f32.mrb[30].mxu1  ;;  %2009 = vmatprep.mubr.bf16.mxu0 %v1141_v54  ;;  %4230 = vmatpush3.bf16.msra.mxu1 %v4491_v48  ;;  %v1085_v12 = vmax.f32 %v867_v55, 0.0 }
 0x1a0   :  { %v1093_v7 = vmax.f32 %v869_v62, 0.0  ;;  %v1086_v9 = vmax.f32 %v946_v52, 0.0  ;;  %v950_v10 = vadd.f32 %v949_v4, %v5030_v43  ;;  %v951_v11 = vpop.f32.mrb[31].mxu1  ;;  %2010 = vmatmul.mubr.bf16.gmra.mrb[84].mxu0 %v1140_v49  ;;  %4231 = vmatprep.subr.bf16.mxu1 %v4752_v8 }
 0x1a1   :  { %v1094_v13 = vmax.f32 %v871_v2, 0.0  ;;  %v1087_v14 = vmax.f32 %v948_v3, 0.0  ;;  %v952_v15 = vadd.f32 %v951_v11, %v5033_v47  ;;  %v3600_v11 = vld [vmem:[#allocation7 + $0x8] ss:$0 sm:$0xff] }
 0x1a2   :  { %v1147_v16 = vpack.c.bf16 %v1093_v7, %v1084_v6  ;;  %v1095_v17 = vmax.f32 %v950_v10, 0.0 }
 0x1a3   :  { %v1148_v18 = vpack.c.bf16 %v1094_v13, %v1085_v12  ;;  %v1096_v19 = vmax.f32 %v952_v15, 0.0  ;;  %v874_v20 = vpop.f32.mrb[32].mxu0  ;;  %4232 = vmatpush3.bf16.msra.mxu1 %v4492_v5 }
 0x1a4   :  { %v1149_v22 = vpack.c.bf16 %v1095_v17, %v1086_v9  ;;  %v875_v23 = vadd.f32 %v874_v20, %v5024_v40  ;;  %v876_v24 = vpop.f32.mrb[33].mxu0  ;;  %4233 = vmatprep.subr.bf16.mxu1 %v4752_v8 }
 0x1a5   :  { %v1150_v25 = vpack.c.bf16 %v1096_v19, %v1087_v14  ;;  %v877_v26 = vadd.f32 %v876_v24, %v5027_v44  ;;  %v878_v27 = vpop.f32.mrb[34].mxu0  ;;  %v955_v28 = vpop.f32.mrb[32].mxu1  ;;  %1945 = vmatprep.mubr.bf16.mxu1 %v1148_v18 }
 0x1a6   :  { %v879_v29 = vadd.f32 %v878_v27, %v5024_v40  ;;  %v956_v30 = vadd.f32 %v955_v28, %v5030_v43  ;;  %v880_v31 = vpop.f32.mrb[35].mxu0  ;;  %v957_v0 = vpop.f32.mrb[33].mxu1  ;;  %1946 = vmatmul.mubr.bf16.gmra.mrb[68].mxu1 %v1147_v16  ;;  %v1102_v57 = vmax.f32 %v875_v23, 0.0 }
 0x1a7   :  { %v881_v56 = vadd.f32 %v880_v31, %v5027_v44  ;;  %v958_v32 = vadd.f32 %v957_v0, %v5033_v47  ;;  %v959_v33 = vpop.f32.mrb[34].mxu1  ;;  %2017 = vmatprep.mubr.bf16.mxu0 %v1150_v25  ;;  %4234 = vmatpush3.bf16.msra.mxu1 %v4493_v21  ;;  %v1103_v39 = vmax.f32 %v877_v26, 0.0 }
 0x1a8   :  { %v1111_v36 = vmax.f32 %v879_v29, 0.0  ;;  %v1104_v37 = vmax.f32 %v956_v30, 0.0  ;;  %v960_v38 = vadd.f32 %v959_v33, %v5030_v43  ;;  %v961_v34 = vpop.f32.mrb[35].mxu1  ;;  %2018 = vmatmul.mubr.bf16.gmra.mrb[88].mxu0 %v1149_v22  ;;  %4235 = vmatprep.subr.bf16.mxu1 %v4752_v8 }
 0x1a9   :  { %v1112_v58 = vmax.f32 %v881_v56, 0.0  ;;  %v1105_v41 = vmax.f32 %v958_v32, 0.0  ;;  %v962_v42 = vadd.f32 %v961_v34, %v5033_v47 }
 0x1aa   :  { %v1156_v60 = vpack.c.bf16 %v1111_v36, %v1102_v57  ;;  %v1113_v45 = vmax.f32 %v960_v38, 0.0 }
 0x1ab   :  { %v1157_v46 = vpack.c.bf16 %v1112_v58, %v1103_v39  ;;  %v1114_v48 = vmax.f32 %v962_v42, 0.0  ;;  %v884_v49 = vpop.f32.mrb[36].mxu0  ;;  %4236 = vmatpush3.bf16.msra.mxu1 %v4494_v35 }
 0x1ac   :  { %v1158_v53 = vpack.c.bf16 %v1113_v45, %v1104_v37  ;;  %v885_v54 = vadd.f32 %v884_v49, %v5024_v40  ;;  %v886_v55 = vpop.f32.mrb[37].mxu0  ;;  %4237 = vmatprep.subr.bf16.mxu1 %v4752_v8  ;;  %v4496_v40 = vld [vmem:[#allocation8 + $0x238] sm:$0xff]  }
 0x1ad   :  { %v1159_v59 = vpack.c.bf16 %v1114_v48, %v1105_v41  ;;  %v887_v61 = vadd.f32 %v886_v55, %v5027_v44  ;;  %v888_v62 = vpop.f32.mrb[38].mxu0  ;;  %1953 = vmatprep.mubr.bf16.mxu1 %v1157_v46  ;;  %v965_v52 = vpop.f32.mrb[36].mxu1 }
 0x1ae   :  { %v889_v63 = vpop.f32.mrb[39].mxu0  ;;  %1954 = vmatmul.mubr.bf16.gmra.mrb[72].mxu1 %v1156_v60  ;;  %v966_v1 = vadd.f32 %v965_v52, %v5030_v43  ;;  %v967_v2 = vpop.f32.mrb[37].mxu1  ;;  %v1120_v6 = vmax.f32 %v885_v54, 0.0  ;;  %v4498_v62 = vld [vmem:[#allocation10] sm:$0xff]  }
 0x1af   :  { %v1121_v3 = vmax.f32 %v887_v61, 0.0  ;;  %2025 = vmatprep.mubr.bf16.mxu0 %v1159_v59  ;;  %v968_v4 = vadd.f32 %v967_v2, %v5033_v47  ;;  %4238 = vmatpush3.bf16.msra.mxu1 %v4495_v51  ;;  %v969_v5 = vpop.f32.mrb[38].mxu1  ;;  %v4497_v61 = vld [vmem:[#allocation10 + $0x40] sm:$0xff]   ;;  %v4500_v2 = vld [vmem:[#allocation10 + $0x8] sm:$0xff]  }
 0x1b0   :  { %v1122_v7 = vmax.f32 %v966_v1, 0.0  ;;  %2026 = vmatmul.mubr.bf16.gmra.mrb[92].mxu0 %v1158_v53  ;;  %4239 = vmatprep.subr.bf16.mxu1 %v4752_v8  ;;  %v970_v44 = vpop.f32.mrb[39].mxu1  ;;  %v1165_v43 = vpack.c.bf16 %v1120_v6, %v1120_v6  ;;  %v4501_v52 = vld [vmem:[#allocation10 + $0xc0] sm:$0xff]   ;;  %v4499_v1 = vld [vmem:[#allocation10 + $0x48] sm:$0xff]   ;;  %v4504_v5 = vld [vmem:[#allocation10 + $0x10] sm:$0xff]  }
 0x1b1   :  { %v1166_v9 = vpack.c.bf16 %v1121_v3, %v1121_v3  ;;  %v1123_v10 = vmax.f32 %v968_v4, 0.0  ;;  %4083 = vmatprep.subr.bf16.mxu0 %v4497_v61  ;;  %v4503_v63 = vld [vmem:[#allocation10 + $0x80] sm:$0xff]   ;;  %v4505_v3 = vld [vmem:[#allocation10 + $0xc8] sm:$0xff]   ;;  %v4502_v4 = vld [vmem:[#allocation10 + $0x50] sm:$0xff]  }
 0x1b2   :  { %v1167_v14 = vpack.c.bf16 %v1122_v7, %v1122_v7  ;;  %4084 = vmatpush3.bf16.msra.mxu0 %v4498_v62  ;;  %v4509_v6 = vld [vmem:[#allocation10 + $0xd0] sm:$0xff]   ;;  %v4507_v44 = vld [vmem:[#allocation10 + $0x58] sm:$0xff]  }
 0x1b3   :  { %v1168_v12 = vpack.c.bf16 %v1123_v10, %v1123_v10  ;;  %v1006_v13 = vpop.f32.mrb[40].mxu0  ;;  %1961 = vmatprep.mubr.bf16.mxu1 %v1166_v9  ;;  %4240 = vmatpush3.bf16.msra.mxu1 %v4496_v40  ;;  %v4506_v40 = vld [vmem:[#allocation10 + $0x88] sm:$0xff]   ;;  %v4510_v7 = vld [vmem:[#allocation10 + $0x90] sm:$0xff]   ;;  %v4508_v9 = vld [vmem:[#allocation10 + $0x18] sm:$0xff]  }
 0x1b4   :  { %v1007_v15 = vadd.f32 %v3600_v11, %v1006_v13  ;;  %v4207_v47 = vpop.f32.mrb[41].mxu0  ;;  %4105 = vmatprep.subr.bf16.mxu1 %v4501_v52  ;;  %4085 = vmatprep.subr.bf16.mxu0 %v4499_v1  ;;  %v4513_v10 = vld [vmem:[#allocation10 + $0xd8] sm:$0xff]   ;;  %v4512_v13 = vld [vmem:[#allocation10 + $0x20] sm:$0xff]  }
 0x1b5   :  { %v1009_v16 = vpop.f32.mrb[42].mxu0  ;;  %2033 = vmatprep.mubr.bf16.mxu0 %v1168_v12  ;;  %v4511_v12 = vld [vmem:[#allocation10 + $0x60] sm:$0xff]   ;;  %v4517_v47 = vld [vmem:[#allocation10 + $0x28] sm:$0xff]  }
 0x1b6   :  { %v1052_v17 = vmax.f32 %v1007_v15, 0.0  ;;  %v1010_v18 = vadd.f32 %v3600_v11, %v1009_v16  ;;  %v4208_v19 = vpop.f32.mrb[43].mxu0  ;;  %1962 = vmatmul.mubr.bf16.gmra.mrb[76].mxu1 %v1165_v43  ;;  %4086 = vmatpush3.bf16.msra.mxu0 %v4500_v2  ;;  %v4516_v43 = vld [vmem:[#allocation10 + $0xe0] sm:$0xff]   ;;  %v4515_v15 = vld [vmem:[#allocation10 + $0x68] sm:$0xff]  }
 0x1b7   :  { %4241 = vmatprep.mubr.msk.bf16.mxu1 %vm4753_vm0, %v4752_v8  ;;  %4087 = vmatprep.subr.bf16.mxu0 %v4502_v4  ;;  %v4519_v16 = vld [vmem:[#allocation10 + $0xe8] sm:$0xff]   ;;  %v4522_v19 = vld [vmem:[#allocation10 + $0x30] sm:$0xff]  }
 0x1b8   :  { %v1061_v20 = vmax.f32 %v1010_v18, 0.0  ;;  %2034 = vmatmul.mubr.bf16.gmra.mrb[96].mxu0 %v1167_v14  ;;  %v4518_v14 = vld [vmem:[#allocation10 + $0xa0] sm:$0xff]   ;;  %v4520_v18 = vld [vmem:[#allocation10 + $0x70] sm:$0xff]  }
 0x1ba   :  { %v1133_v21 = vpack.c.bf16 %v1061_v20, %v1052_v17  ;;  %4088 = vmatpush3.bf16.msra.mxu0 %v4504_v5  ;;  %v4521_v17 = vld [vmem:[#allocation10 + $0xa8] sm:$0xff]  }
 0x1bb   :  { %v1014_v22 = vpop.f32.mrb[44].mxu0  ;;  %4089 = vmatprep.subr.bf16.mxu0 %v4507_v44 }
 0x1bc   :  { %v1015_v23 = vadd.f32 %v3600_v11, %v1014_v22  ;;  %v4211_v24 = vpop.f32.mrb[45].mxu0  ;;  %v4523_v22 = vld [vmem:[#allocation10 + $0xf0] sm:$0xff]  }
 0x1bd   :  { %v1017_v25 = vpop.f32.mrb[46].mxu0  ;;  %v4524_v24 = vld [vmem:[#allocation10 + $0xb0] sm:$0xff]  }
 0x1be   :  { %v1070_v26 = vmax.f32 %v1015_v23, 0.0  ;;  %v1018_v27 = vadd.f32 %v3600_v11, %v1017_v25  ;;  %v4212_v28 = vpop.f32.mrb[47].mxu0  ;;  %4242 = vmatmul.mubr.bf16.vlgmr.msra.gmra.mrb[80].mxu1 %v1133_v21  ;;  %4090 = vmatpush3.bf16.msra.mxu0 %v4508_v9  ;;  %v5092_v21 = vld [vmem:[%s5380_s4] ss:$0 sm:$0xff]  ;;  %v4525_v25 = vld [vmem:[#allocation10 + $0x78] sm:$0xff]  }
 0x1bf   :  { %4245 = vmatprep.mubr.msk.bf16.mxu1 %vm4753_vm0, %v4752_v8  ;;  %4106 = vmatpush3.bf16.msra.mxu1 %v4503_v63 }
 0x1c0   :  { %v1079_v29 = vmax.f32 %v1018_v27, 0.0  ;;  %4107 = vmatprep.subr.bf16.mxu1 %v4505_v3  ;;  %4091 = vmatprep.subr.bf16.mxu0 %v4511_v12 }
 0x1c2   :  { %v1142_v30 = vpack.c.bf16 %v1079_v29, %v1070_v26  ;;  %4092 = vmatpush3.bf16.msra.mxu0 %v4512_v13  ;;  %v4526_v26 = vld [vmem:[#allocation10 + $0x38] sm:$0xff]  }
 0x1c3   :  { %v1022_v31 = vpop.f32.mrb[48].mxu0  ;;  %4108 = vmatpush3.bf16.msra.mxu1 %v4506_v40  ;;  %4093 = vmatprep.subr.bf16.mxu0 %v4515_v15 }
 0x1c4   :  { %v1023_v0 = vadd.f32 %v3600_v11, %v1022_v31  ;;  %v4215_v56 = vpop.f32.mrb[49].mxu0  ;;  %4109 = vmatprep.subr.bf16.mxu1 %v4509_v6 }
 0x1c5   :  { %v1025_v32 = vpop.f32.mrb[50].mxu0  ;;  %v4528_v56 = vld [vmem:[#allocation10 + $0xb8] sm:$0xff]  }
 0x1c6   :  { %v1088_v33 = vmax.f32 %v1023_v0, 0.0  ;;  %v1026_v35 = vadd.f32 %v3600_v11, %v1025_v32  ;;  %v4216_v57 = vpop.f32.mrb[51].mxu0  ;;  %4246 = vmatmul.mubr.bf16.gmra.mrb[84].mxu1 %v1142_v30  ;;  %4094 = vmatpush3.bf16.msra.mxu0 %v4517_v47  ;;  %v4527_v30 = vld [vmem:[#allocation10 + $0xf8] sm:$0xff]  }
 0x1c7   :  { %4249 = vmatprep.mubr.msk.bf16.mxu1 %vm4753_vm0, %v4752_v8  ;;  %4110 = vmatpush3.bf16.msra.mxu1 %v4510_v7 }
 0x1c8   :  { %v1097_v36 = vmax.f32 %v1026_v35, 0.0  ;;  %4111 = vmatprep.subr.bf16.mxu1 %v4513_v10  ;;  %4095 = vmatprep.subr.bf16.mxu0 %v4520_v18 }
 0x1ca   :  { %v1151_v37 = vpack.c.bf16 %v1097_v36, %v1088_v33  ;;  %4096 = vmatpush3.bf16.msra.mxu0 %v4522_v19 }
 0x1cb   :  { %v1030_v38 = vpop.f32.mrb[52].mxu0  ;;  %4097 = vmatprep.subr.bf16.mxu0 %v4525_v25 }
 0x1cc   :  { %v1031_v34 = vadd.f32 %v3600_v11, %v1030_v38  ;;  %v4219_v39 = vpop.f32.mrb[53].mxu0 }
 0x1cd   :  { %v1033_v58 = vpop.f32.mrb[54].mxu0  ;;  %v4529_v39 = vld [vmem:[#allocation10 + $0x140] sm:$0xff]  }
 0x1ce   :  { %v1106_v41 = vmax.f32 %v1031_v34, 0.0  ;;  %v1034_v42 = vadd.f32 %v3600_v11, %v1033_v58  ;;  %v4220_v60 = vpop.f32.mrb[55].mxu0  ;;  %4250 = vmatmul.mubr.bf16.gmra.mrb[88].mxu1 %v1151_v37  ;;  %4098 = vmatpush3.bf16.msra.mxu0 %v4526_v26 }
 0x1cf   :  { %4253 = vmatprep.mubr.msk.bf16.mxu1 %vm4753_vm0, %v4752_v8  ;;  %4127 = vmatprep.subr.bf16.mxu0 %v4529_v39  ;;  %v4531_v60 = vld [vmem:[#allocation10 + $0x1c0] sm:$0xff]  }
 0x1d0   :  { %v1115_v45 = vmax.f32 %v1034_v42, 0.0 }
 0x1d2   :  { %v1160_v46 = vpack.c.bf16 %v1115_v45, %v1106_v41 }
 0x1d3   :  { %v1038_v48 = vpop.f32.mrb[56].mxu0 }
 0x1d4   :  { %v1039_v49 = vadd.f32 %v3600_v11, %v1038_v48  ;;  %v4223_v51 = vpop.f32.mrb[57].mxu0  ;;  %v4514_v11 = vld [vmem:[#allocation10 + $0x98] sm:$0xff]  }
 0x1d5   :  { %v1041_v53 = vpop.f32.mrb[58].mxu0  ;;  %4112 = vmatpush3.bf16.msra.mxu1 %v4514_v11 }
 0x1d6   :  { %v1124_v54 = vmax.f32 %v1039_v49, 0.0  ;;  %4254 = vmatmul.mubr.bf16.gmra.mrb[92].mxu1 %v1160_v46  ;;  %v4224_v55 = vpop.f32.mrb[59].mxu0  ;;  %4113 = vmatprep.subr.bf16.mxu1 %v4516_v43 }
 0x1d7   :  { %4257 = vmatprep.mubr.msk.bf16.mxu1 %vm4753_vm0, %v4752_v8 }
 0x1d8   :  { %v1169_v59 = vpack.c.bf16 %v1124_v54, %v1124_v54 }
 0x1d9   :  { %4114 = vmatpush3.bf16.msra.mxu1 %v4518_v14 }
 0x1da   :  { %4115 = vmatprep.subr.bf16.mxu1 %v4519_v16 }
 0x1dd   :  { %4116 = vmatpush3.bf16.msra.mxu1 %v4521_v17 }
 0x1de   :  { %4258 = vmatmul.mubr.bf16.gmra.mrb[96].mxu1 %v1169_v59  ;;  %4117 = vmatprep.subr.bf16.mxu1 %v4523_v22 }
 0x1e1   :  { %4118 = vmatpush3.bf16.msra.mxu1 %v4524_v24 }
 0x1e2   :  { %4119 = vmatprep.subr.bf16.mxu1 %v4527_v30 }
 0x1e5   :  { %4120 = vmatpush3.bf16.msra.mxu1 %v4528_v56 }
 0x1e6   :  { %4149 = vmatprep.subr.bf16.mxu1 %v4531_v60 }
 0x241   :  { %v3902_v20 = vpop.f32.mrb[40].mxu1  ;;  %v3948_v29 = vpop.f32.mrb[60].mxu0 }
 0x242   :  { %v3903_v23 = vpop.f32.mrb[41].mxu1  ;;  %v3949_v0 = vpop.f32.mrb[61].mxu0 }
 0x243   :  { %v3904_v27 = vadd.f32 %v3903_v23, %v3902_v20  ;;  %v3905_v28 = vpop.f32.mrb[42].mxu1  ;;  %v3950_v35 = vadd.f32 %v3949_v0, %v3948_v29  ;;  %v3951_v57 = vpop.f32.mrb[62].mxu0 }
 0x244   :  { %v3906_v31 = vpop.f32.mrb[43].mxu1  ;;  %v3952_v36 = vpop.f32.mrb[63].mxu0 }
 0x245   :  { %v1788_v32 = vadd.f32 %v3904_v27, %v5092_v21  ;;  %v3907_v33 = vadd.f32 %v3906_v31, %v3905_v28  ;;  %v3953_v34 = vadd.f32 %v3952_v36, %v3951_v57 }
 0x247   :  { %v1791_v37 = vadd.f32 %v3907_v33, %v5092_v21  ;;  %v5096_v38 = vadd.f32 %v3950_v35, %v1788_v32 }
 0x249   :  { %v5098_v58 = vadd.f32 %v3953_v34, %v1791_v37  ;;  %v3908_v41 = vpop.f32.mrb[44].mxu1 }
 0x24a   :  { %v3909_v42 = vpop.f32.mrb[45].mxu1 }
 0x24b   :  { %v3910_v45 = vadd.f32 %v3909_v42, %v3908_v41  ;;  %v3911_v46 = vpop.f32.mrb[46].mxu1  ;;  %v3954_v48 = vpop.f32.mrb[64].mxu0 }
 0x24c   :  { %v3912_v49 = vpop.f32.mrb[47].mxu1  ;;  %v3955_v51 = vpop.f32.mrb[65].mxu0 }
 0x24d   :  { %v1796_v53 = vadd.f32 %v3910_v45, %v5092_v21  ;;  %v3913_v54 = vadd.f32 %v3912_v49, %v3911_v46  ;;  %v3956_v55 = vadd.f32 %v3955_v51, %v3954_v48  ;;  %v3957_v59 = vpop.f32.mrb[66].mxu0 }
 0x24e   :  { %v3958_v61 = vpop.f32.mrb[67].mxu0 }
 0x24f   :  { %v1799_v62 = vadd.f32 %v3913_v54, %v5092_v21  ;;  %v5102_v52 = vadd.f32 %v3956_v55, %v1796_v53  ;;  %v3959_v63 = vadd.f32 %v3958_v61, %v3957_v59 }
 0x251   :  { %v5104_v1 = vadd.f32 %v3959_v63, %v1799_v62  ;;  %v3914_v2 = vpop.f32.mrb[48].mxu1 }
 0x252   :  { %v3915_v3 = vpop.f32.mrb[49].mxu1 }
 0x253   :  { %v3916_v4 = vadd.f32 %v3915_v3, %v3914_v2  ;;  %v3917_v40 = vpop.f32.mrb[50].mxu1  ;;  %v3960_v5 = vpop.f32.mrb[68].mxu0 }
 0x254   :  { %v3918_v6 = vpop.f32.mrb[51].mxu1  ;;  %v3961_v7 = vpop.f32.mrb[69].mxu0 }
 0x255   :  { %v1804_v44 = vadd.f32 %v3916_v4, %v5092_v21  ;;  %v3919_v9 = vadd.f32 %v3918_v6, %v3917_v40  ;;  %v3962_v10 = vadd.f32 %v3961_v7, %v3960_v5  ;;  %v3963_v11 = vpop.f32.mrb[70].mxu0 }
 0x256   :  { %v3964_v12 = vpop.f32.mrb[71].mxu0 }
 0x257   :  { %v1807_v13 = vadd.f32 %v3919_v9, %v5092_v21  ;;  %v5108_v43 = vadd.f32 %v3962_v10, %v1804_v44  ;;  %v3965_v14 = vadd.f32 %v3964_v12, %v3963_v11 }
 0x259   :  { %v5110_v15 = vadd.f32 %v3965_v14, %v1807_v13  ;;  %v3920_v47 = vpop.f32.mrb[52].mxu1 }
 0x25a   :  { %v3921_v16 = vpop.f32.mrb[53].mxu1 }
 0x25b   :  { %v3922_v17 = vadd.f32 %v3921_v16, %v3920_v47  ;;  %v3923_v18 = vpop.f32.mrb[54].mxu1  ;;  %v3966_v19 = vpop.f32.mrb[72].mxu0 }
 0x25c   :  { %v3924_v20 = vpop.f32.mrb[55].mxu1  ;;  %v3967_v22 = vpop.f32.mrb[73].mxu0 }
 0x25d   :  { %v1812_v23 = vadd.f32 %v3922_v17, %v5092_v21  ;;  %v3925_v24 = vadd.f32 %v3924_v20, %v3923_v18  ;;  %v3968_v25 = vadd.f32 %v3967_v22, %v3966_v19  ;;  %v3969_v26 = vpop.f32.mrb[74].mxu0 }
 0x25e   :  { %v3970_v27 = vpop.f32.mrb[75].mxu0 }
 0x25f   :  { %v1815_v28 = vadd.f32 %v3925_v24, %v5092_v21  ;;  %v5114_v29 = vadd.f32 %v3968_v25, %v1812_v23  ;;  %v3971_v30 = vadd.f32 %v3970_v27, %v3969_v26 }
 0x261   :  { %v5116_v31 = vadd.f32 %v3971_v30, %v1815_v28  ;;  %v3926_v0 = vpop.f32.mrb[56].mxu1 }
 0x262   :  { %v3927_v56 = vpop.f32.mrb[57].mxu1 }
 0x263   :  { %v3928_v32 = vadd.f32 %v3927_v56, %v3926_v0  ;;  %v3929_v33 = vpop.f32.mrb[58].mxu1  ;;  %v3972_v35 = vpop.f32.mrb[76].mxu0 }
 0x264   :  { %v3930_v57 = vpop.f32.mrb[59].mxu1  ;;  %v3973_v36 = vpop.f32.mrb[77].mxu0 }
 0x265   :  { %v1820_v37 = vadd.f32 %v3928_v32, %v5092_v21  ;;  %v3974_v34 = vadd.f32 %v3973_v36, %v3972_v35  ;;  %v3975_v39 = vpop.f32.mrb[78].mxu0 }
 0x266   :  { %v3976_v41 = vpop.f32.mrb[79].mxu0 }
 0x267   :  { %v5119_v42 = vadd.f32 %v3974_v34, %v1820_v37 }
 0x269   :  { %v3994_v60 = vpop.f32.mrb[60].mxu1 }
 0x26a   :  { %v3995_v45 = vpop.f32.mrb[61].mxu1 }
 0x26b   :  { %v3996_v46 = vadd.f32 %v3995_v45, %v3994_v60  ;;  %v3997_v48 = vpop.f32.mrb[62].mxu1  ;;  %v4040_v49 = vpop.f32.mrb[80].mxu0 }
 0x26c   :  { %v3998_v51 = vpop.f32.mrb[63].mxu1  ;;  %v4041_v53 = vpop.f32.mrb[81].mxu0 }
 0x26d   :  { %v1932_v54 = vadd.f32 %v3996_v46, %v5096_v38  ;;  %v3999_v55 = vadd.f32 %v3998_v51, %v3997_v48  ;;  %v4042_v59 = vadd.f32 %v4041_v53, %v4040_v49  ;;  %v4043_v61 = vpop.f32.mrb[82].mxu0 }
 0x26e   :  { %v4044_v62 = vpop.f32.mrb[83].mxu0 }
 0x26f   :  { %v1935_v21 = vadd.f32 %v3999_v55, %v5098_v58  ;;  %v4045_v63 = vadd.f32 %v4044_v62, %v4043_v61  ;;  %v5123_v2 = vadd.f32 %v4042_v59, %v1932_v54 }
 0x271   :  { %v4000_v3 = vpop.f32.mrb[64].mxu1  ;;  %v5125_v4 = vadd.f32 %v4045_v63, %v1935_v21 }
 0x272   :  { %v4001_v40 = vpop.f32.mrb[65].mxu1 }
 0x273   :  { %v4002_v5 = vadd.f32 %v4001_v40, %v4000_v3  ;;  %v4003_v6 = vpop.f32.mrb[66].mxu1  ;;  %v4046_v7 = vpop.f32.mrb[84].mxu0  ;;  %v4754_v3 = vmov 1966171168  }
 0x274   :  { %v4004_v44 = vpop.f32.mrb[67].mxu1  ;;  %v4047_v9 = vpop.f32.mrb[85].mxu0  ;;  %v2134_v40 = vunpack.c.l.s4 %v4754_v3 }
 0x275   :  { %v1940_v38 = vadd.f32 %v4002_v5, %v5102_v52  ;;  %v4005_v10 = vadd.f32 %v4004_v44, %v4003_v6  ;;  %v4048_v11 = vadd.f32 %v4047_v9, %v4046_v7  ;;  %v4049_v12 = vpop.f32.mrb[86].mxu0 }
 0x276   :  { %v4050_v13 = vpop.f32.mrb[87].mxu0  ;;  %v2135_v9 = vunpack.c.0.s8 %v2134_v40 }
 0x277   :  { %v1943_v58 = vadd.f32 %v4005_v10, %v5104_v1  ;;  %v4051_v14 = vadd.f32 %v4050_v13, %v4049_v12  ;;  %v5129_v47 = vadd.f32 %v4048_v11, %v1940_v38 }
 0x279   :  { %v4006_v16 = vpop.f32.mrb[68].mxu1  ;;  %v5131_v17 = vadd.f32 %v4051_v14, %v1943_v58 }
 0x27a   :  { %v4007_v18 = vpop.f32.mrb[69].mxu1 }
 0x27b   :  { %v4008_v19 = vadd.f32 %v4007_v18, %v4006_v16  ;;  %v4009_v20 = vpop.f32.mrb[70].mxu1  ;;  %v4052_v22 = vpop.f32.mrb[88].mxu0 }
 0x27c   :  { %v4010_v23 = vpop.f32.mrb[71].mxu1  ;;  %v4053_v24 = vpop.f32.mrb[89].mxu0 }
 0x27d   :  { %v1948_v52 = vadd.f32 %v4008_v19, %v5108_v43  ;;  %v4011_v25 = vadd.f32 %v4010_v23, %v4009_v20  ;;  %v4054_v26 = vadd.f32 %v4053_v24, %v4052_v22  ;;  %v4055_v27 = vpop.f32.mrb[90].mxu0 }
 0x27e   :  { %v4056_v28 = vpop.f32.mrb[91].mxu0 }
 0x27f   :  { %v1951_v1 = vadd.f32 %v4011_v25, %v5110_v15  ;;  %v4057_v30 = vadd.f32 %v4056_v28, %v4055_v27  ;;  %v5135_v0 = vadd.f32 %v4054_v26, %v1948_v52 }
 0x281   :  { %v4012_v56 = vpop.f32.mrb[72].mxu1  ;;  %v5137_v32 = vadd.f32 %v4057_v30, %v1951_v1 }
 0x282   :  { %v4013_v33 = vpop.f32.mrb[73].mxu1 }
 0x283   :  { %v4014_v35 = vadd.f32 %v4013_v33, %v4012_v56  ;;  %v4015_v57 = vpop.f32.mrb[74].mxu1  ;;  %v4058_v36 = vpop.f32.mrb[92].mxu0 }
 0x284   :  { %v4016_v37 = vpop.f32.mrb[75].mxu1  ;;  %v4059_v34 = vpop.f32.mrb[93].mxu0 }
 0x285   :  { %v1956_v43 = vadd.f32 %v4014_v35, %v5114_v29  ;;  %v4017_v39 = vadd.f32 %v4016_v37, %v4015_v57  ;;  %v4060_v41 = vadd.f32 %v4059_v34, %v4058_v36  ;;  %v4061_v60 = vpop.f32.mrb[94].mxu0 }
 0x286   :  { %v4062_v45 = vpop.f32.mrb[95].mxu0 }
 0x287   :  { %v1959_v15 = vadd.f32 %v4017_v39, %v5116_v31  ;;  %v4063_v46 = vadd.f32 %v4062_v45, %v4061_v60  ;;  %v5141_v48 = vadd.f32 %v4060_v41, %v1956_v43 }
 0x289   :  { %v4018_v49 = vpop.f32.mrb[76].mxu1  ;;  %v5143_v51 = vadd.f32 %v4063_v46, %v1959_v15 }
 0x28a   :  { %v4019_v53 = vpop.f32.mrb[77].mxu1 }
 0x28b   :  { %v4020_v54 = vadd.f32 %v4019_v53, %v4018_v49  ;;  %v4021_v55 = vpop.f32.mrb[78].mxu1  ;;  %v4064_v59 = vpop.f32.mrb[96].mxu0 }
 0x28c   :  { %v4022_v61 = vpop.f32.mrb[79].mxu1  ;;  %v4065_v62 = vpop.f32.mrb[97].mxu0 }
 0x28d   :  { %v1964_v29 = vadd.f32 %v4020_v54, %v5119_v42  ;;  %v4066_v21 = vadd.f32 %v4065_v62, %v4064_v59  ;;  %v4067_v63 = vpop.f32.mrb[98].mxu0  ;;  %v5151_v42 = vsub.s32 %v2135_v9, %v4963_v50 }
 0x28e   :  { %v4068_v5 = vpop.f32.mrb[99].mxu0 }
 0x28f   :  { %v5146_v31 = vadd.f32 %v4066_v21, %v1964_v29 }
 0x291   :  { %v2075_v6 = vpop.f32.mrb[80].mxu1 }
 0x292   :  { %v2076_v7 = vadd.f32 %v2075_v6, %v5123_v2  ;;  %v4243_v44 = vpop.f32.mrb[81].mxu1 }
 0x293   :  { %v2078_v38 = vpop.f32.mrb[82].mxu1 }
 0x294   :  { %v2079_v10 = vadd.f32 %v2078_v38, %v5125_v4  ;;  %v4244_v11 = vpop.f32.mrb[83].mxu1  ;;  %v2113_v12 = vmax.f32 %v2076_v7, 0.0 }
 0x296   :  { %v2114_v13 = vmax.f32 %v2079_v10, 0.0 }
 0x298   :  { %v2122_v58 = vpack.c.bf16 %v2114_v13, %v2113_v12  ;;  %v3751_v14 = vpack.c.bf16 %v2114_v13, %v2114_v13 }
 0x299   :  { %v2083_v16 = vpop.f32.mrb[84].mxu1 }
 0x29a   :  { %v2139_v18 = vrot.slane %v2122_v58, %v5151_v42  ;;  %v2146_v19 = vrot.slane %v3751_v14, %v5151_v42  ;;  %v2084_v2 = vadd.f32 %v2083_v16, %v5129_v47  ;;  %v4247_v20 = vpop.f32.mrb[85].mxu1 }
 0x29b   :  { %v2086_v22 = vpop.f32.mrb[86].mxu1 }
 0x29c   :  { %v2147_v23 = vcombine.high %v2139_v18, %v2139_v18  ;;  %v2148_v24 = vcombine.high %v2146_v19, %v2146_v19  ;;  %v2155_v4 = vrot.slane %v2139_v18, %v5151_v42  ;;  %v2162_v52 = vrot.slane %v2146_v19, %v5151_v42  ;;  %v4248_v25 = vpop.f32.mrb[87].mxu1 }
 0x29d   :  { %v2087_v50 = vadd.f32 %v2086_v22, %v5131_v17  ;;  %v2115_v47 = vmax.f32 %v2084_v2, 0.0 }
 0x29e   :  { %v2169_v26 = vrot.slane %v2147_v23, %v5151_v42  ;;  %v2176_v27 = vrot.slane %v2148_v24, %v5151_v42  ;;  %v2177_v28 = vcombine.high %v2155_v4, %v2155_v4  ;;  %v2178_v1 = vcombine.high %v2162_v52, %v2162_v52 }
 0x29f   :  { %v2353_v30 = vunpack.i.h.s16 %v2155_v4  ;;  %v2361_v56 = vunpack.i.h.s16 %v2162_v52  ;;  %v2116_v33 = vmax.f32 %v2087_v50, 0.0 }
 0x2a0   :  { %v2179_v35 = vcombine.high %v2169_v26, %v2169_v26  ;;  %v2180_v57 = vcombine.high %v2176_v27, %v2176_v27  ;;  %v2355_v36 = vunpack.i.h.s16 %v2169_v26  ;;  %v2357_v37 = vunpack.i.h.s16 %v2177_v28 }
 0x2a1   :  { %v2363_v34 = vunpack.i.h.s16 %v2176_v27  ;;  %v2365_v43 = vunpack.i.h.s16 %v2178_v1  ;;  %v5161_v39 = vpack.i.b16 %v2361_v56, %v2155_v4  ;;  %v2123_v41 = vpack.c.bf16 %v2116_v33, %v2115_v47  ;;  %v2091_v17 = vpop.f32.mrb[88].mxu1 }
 0x2a2   :  { %v2367_v60 = vunpack.i.h.s16 %v2180_v57  ;;  %v3752_v45 = vpack.c.bf16 %v2116_v33, %v2116_v33  ;;  %v2092_v15 = vadd.f32 %v2091_v17, %v5135_v0  ;;  %v4251_v46 = vpop.f32.mrb[89].mxu1  ;;  %v5169_v59 = vpack.i.b16 %v2176_v27, %v2353_v30 }
 0x2a3   :  { %v5164_v49 = vpack.i.b16 %v2363_v34, %v2169_v26  ;;  %v5166_v53 = vpack.i.b16 %v2365_v43, %v2177_v28  ;;  %v2188_v54 = vrot.slane %v2123_v41, %v5151_v42  ;;  %v2094_v55 = vpop.f32.mrb[90].mxu1  ;;  %v2359_v62 = vunpack.i.h.s16 %v2179_v35 }
 0x2a4   :  { %v2195_v61 = vrot.slane %v3752_v45, %v5151_v42  ;;  %v2095_v29 = vadd.f32 %v2094_v55, %v5137_v32  ;;  %v4252_v21 = vpop.f32.mrb[91].mxu1  ;;  %v5173_v63 = vpack.i.b16 %v2178_v1, %v2355_v36  ;;  %v5176_v40 = vpack.i.b16 %v2180_v57, %v2357_v37 }
 0x2a5   :  { %v2196_v3 = vcombine.high %v2188_v54, %v2188_v54  ;;  %v2204_v0 = vrot.slane %v2188_v54, %v5151_v42  ;;  %v5178_v5 = vpack.i.b16 %v2367_v60, %v2179_v35  ;;  %v2117_v44 = vmax.f32 %v2092_v15, 0.0 }
 0x2a6   :  { %v2197_v6 = vcombine.high %v2195_v61, %v2195_v61  ;;  %v5181_v7 = vrot.slane %v2195_v61, %v5151_v42  ;;  %v2118_v9 = vmax.f32 %v2095_v29, 0.0 }
 0x2a7   :  { %v2218_v38 = vrot.slane %v2196_v3, %v5151_v42  ;;  %v5184_v10 = vcombine.high %v2204_v0, %v2204_v0  ;;  %v2369_v32 = vunpack.i.h.s16 %v2204_v0  ;;  %v5186_v11 = vpack.i.b16 %v2204_v0, %v2359_v62 }
 0x2a8   :  { %v5189_v12 = vrot.slane %v2197_v6, %v5151_v42  ;;  %v2227_v13 = vcombine.high %v5181_v7, %v5181_v7  ;;  %v2377_v58 = vunpack.i.h.s16 %v5181_v7  ;;  %v2124_v14 = vpack.c.bf16 %v2118_v9, %v2117_v44 }
 0x2a9   :  { %v5194_v16 = vcombine.high %v2218_v38, %v2218_v38  ;;  %v2371_v18 = vunpack.i.h.s16 %v2218_v38  ;;  %v2373_v19 = vunpack.i.h.s16 %v5184_v10  ;;  %v5197_v2 = vpack.i.b16 %v2369_v32, %v2162_v52  ;;  %v2099_v20 = vpop.f32.mrb[92].mxu1 }
 0x2aa   :  { %v5201_v22 = vcombine.high %v5189_v12, %v5189_v12  ;;  %v2379_v23 = vunpack.i.h.s16 %v5189_v12  ;;  %v2381_v24 = vunpack.i.h.s16 %v2227_v13  ;;  %v3753_v4 = vpack.c.bf16 %v2118_v9, %v2118_v9  ;;  %v4255_v25 = vpop.f32.mrb[93].mxu1 }
 0x2ab   :  { %v2237_v50 = vrot.slane %v2124_v14, %v5151_v42  ;;  %v2375_v26 = vunpack.i.h.s16 %v5194_v16  ;;  %v2100_v27 = vadd.f32 %v2099_v20, %v5141_v48  ;;  %v2102_v28 = vpop.f32.mrb[94].mxu1  ;;  %v3760_v1 = vpack.i.b16 %v2227_v13, %v2371_v18 }
 0x2ac   :  { %v2383_v52 = vunpack.i.h.s16 %v5201_v22  ;;  %v3756_v30 = vpack.i.b16 %v2379_v23, %v2218_v38  ;;  %v5209_v56 = vpack.i.b16 %v2381_v24, %v5184_v10  ;;  %v2244_v47 = vrot.slane %v3753_v4, %v5151_v42  ;;  %v4256_v33 = vpop.f32.mrb[95].mxu1 }
 0x2ad   :  { %v2245_v35 = vcombine.high %v2237_v50, %v2237_v50  ;;  %v2253_v57 = vrot.slane %v2237_v50, %v5151_v42  ;;  %v2119_v36 = vmax.f32 %v2100_v27, 0.0  ;;  %v2103_v37 = vadd.f32 %v2102_v28, %v5143_v51 }
 0x2ae   :  { %v2428_v34 = vcombine.low %v5161_v39, %v3756_v30  ;;  %v2486_v48 = vcombine.low %v5164_v49, %v5209_v56  ;;  %v2246_v43 = vcombine.high %v2244_v47, %v2244_v47  ;;  %v2260_v41 = vrot.slane %v2244_v47, %v5151_v42 }
 0x2af   :  { %v5219_v17 = vrot.slane %v2245_v35, %v5151_v42  ;;  %v2275_v60 = vcombine.high %v2253_v57, %v2253_v57  ;;  %v2385_v45 = vunpack.i.h.s16 %v2253_v57  ;;  %v3776_v15 = vpack.i.b16 %v2253_v57, %v2375_v26 }
 0x2b0   :  { %v5222_v46 = vrot.slane %v2246_v43, %v5151_v42  ;;  %v5224_v54 = vcombine.high %v2260_v41, %v2260_v41  ;;  %v2393_v51 = vunpack.i.h.s16 %v2260_v41  ;;  %v2120_v55 = vmax.f32 %v2103_v37, 0.0 }
 0x2b1   :  { %v2277_v39 = vcombine.high %v5219_v17, %v5219_v17  ;;  %v2387_v61 = vunpack.i.h.s16 %v5219_v17  ;;  %v2389_v62 = vunpack.i.h.s16 %v2275_v60  ;;  %v5230_v29 = vpack.i.b16 %v2385_v45, %v5181_v7  ;;  %v2107_v21 = vpop.f32.mrb[96].mxu1 }
 0x2b2   :  { %v2278_v3 = vcombine.high %v5222_v46, %v5222_v46  ;;  %v2395_v0 = vunpack.i.h.s16 %v5222_v46  ;;  %v2397_v6 = vunpack.i.h.s16 %v5224_v54  ;;  %v2125_v44 = vpack.c.bf16 %v2120_v55, %v2119_v36  ;;  %v4259_v9 = vpop.f32.mrb[97].mxu1 }
 0x2b3   :  { %v3754_v38 = vpack.c.bf16 %v2120_v55, %v2120_v55  ;;  %v2391_v10 = vunpack.i.h.s16 %v2277_v39  ;;  %v2108_v32 = vadd.f32 %v2107_v21, %v5146_v31  ;;  %v2110_v13 = vpop.f32.mrb[98].mxu1  ;;  %v2457_v14 = vcombine.low %v5169_v59, %v3760_v1 }
 0x2b4   :  { %v2399_v18 = vunpack.i.h.s16 %v2278_v3  ;;  %v3757_v20 = vpack.i.b16 %v2397_v6, %v2275_v60  ;;  %v2286_v23 = vrot.slane %v2125_v44, %v5151_v42  ;;  %v4260_v24 = vpop.f32.mrb[99].mxu1  ;;  %v3761_v4 = vpack.i.b16 %v2278_v3, %v2389_v62 }
 0x2b5   :  { %v2293_v25 = vrot.slane %v3754_v38, %v5151_v42  ;;  %v2121_v50 = vmax.f32 %v2108_v32, 0.0  ;;  %v5241_v26 = vrot.slane %v2457_v14, %v5151_v42  ;;  %v5244_v27 = vrot.slane %v2428_v34, %v5151_v42 }
 0x2b6   :  { %v3765_v28 = vpack.i.b16 %v2399_v18, %v2277_v39  ;;  %v2294_v31 = vcombine.high %v2286_v23, %v2286_v23  ;;  %v2302_v30 = vrot.slane %v2286_v23, %v5151_v42  ;;  %v3768_v59 = vpack.i.b16 %v5201_v22, %v2373_v19  ;;  %v4532_v22 = vld [vmem:[#allocation10 + $0x180] sm:$0xff]  }
 0x2b7   :  { %v2295_v1 = vcombine.high %v2293_v25, %v2293_v25  ;;  %v2309_v47 = vrot.slane %v2293_v25, %v5151_v42  ;;  %v2126_v33 = vpack.c.bf16 %v2121_v50, %v2121_v50  ;;  %v2573_v35 = vcombine.low %v5176_v40, %v3776_v15 }
 0x2b8   :  { %v5251_v57 = vrot.slane %v2294_v31, %v5151_v42  ;;  %v5253_v36 = vcombine.high %v2302_v30, %v2302_v30  ;;  %v2401_v37 = vunpack.i.h.s16 %v2302_v30  ;;  %v3769_v34 = vpack.i.b16 %v2302_v30, %v2391_v10 }
 0x2b9   :  { %v2323_v43 = vrot.slane %v2295_v1, %v5151_v42  ;;  %v2325_v60 = vcombine.high %v2309_v47, %v2309_v47  ;;  %v2409_v45 = vunpack.i.h.s16 %v2309_v47  ;;  %v2334_v55 = vrot.slane %v2126_v33, %v5151_v42 }
 0x2ba   :  { %v2326_v19 = vcombine.high %v5251_v57, %v5251_v57  ;;  %v2403_v39 = vunpack.i.h.s16 %v5251_v57  ;;  %v2405_v40 = vunpack.i.h.s16 %v5253_v36  ;;  %v5261_v15 = vpack.i.b16 %v2401_v37, %v2260_v41 }
 0x2bb   :  { %v5263_v62 = vcombine.high %v2323_v43, %v2323_v43  ;;  %v2411_v21 = vunpack.i.h.s16 %v2323_v43  ;;  %v2413_v3 = vunpack.i.h.s16 %v2325_v60  ;;  %v2335_v6 = vcombine.high %v2334_v55, %v2334_v55 }
 0x2bc   :  { %v2342_v44 = vrot.slane %v2334_v55, %v5151_v42  ;;  %v2407_v9 = vunpack.i.h.s16 %v2326_v19  ;;  %v2515_v38 = vcombine.low %v5173_v63, %v3768_v59  ;;  %v3777_v10 = vpack.i.b16 %v5251_v57, %v2393_v51 }
 0x2bd   :  { %v2415_v32 = vunpack.i.h.s16 %v5263_v62  ;;  %v2349_v13 = vrot.slane %v2335_v6, %v5151_v42  ;;  %v2581_v14 = vrot.slane %v2573_v35, %v5151_v42  ;;  %v2494_v41 = vrot.slane %v2486_v48, %v5151_v42 }
 0x2be   :  { %v2350_v18 = vcombine.high %v2342_v44, %v2342_v44  ;;  %v2417_v23 = vunpack.i.h.s16 %v2342_v44  ;;  %v3762_v24 = vpack.i.b16 %v2342_v44, %v2407_v9  ;;  %v2523_v25 = vrot.slane %v2515_v38, %v5151_v42 }
 0x2bf   :  { %v3758_v50 = vpack.i.b16 %v2415_v32, %v2326_v19  ;;  %v5276_v63 = vcombine.high %v2349_v13, %v2349_v13  ;;  %v2419_v51 = vunpack.i.h.s16 %v2349_v13  ;;  %v3770_v31 = vpack.i.b16 %v2349_v13, %v2409_v45 }
 0x2c0   :  { %v2421_v30 = vunpack.i.h.s16 %v2350_v18  ;;  %v3766_v59 = vpack.i.b16 %v2417_v23, %v2309_v47  ;;  %v2458_v1 = vcombine.low %v3761_v4, %v3762_v24  ;;  %v3778_v33 = vpack.i.b16 %v2350_v18, %v2411_v21 }
 0x2c1   :  { %v2429_v35 = vcombine.low %v3757_v20, %v3758_v50  ;;  %v2423_v37 = vunpack.i.h.s16 %v5276_v63  ;;  %v3774_v55 = vpack.i.b16 %v2419_v51, %v2323_v43  ;;  %v2516_v49 = vcombine.low %v3769_v34, %v3770_v31  ;;  %v4534_v50 = vld [vmem:[#allocation10 + $0x108] sm:$0xff]   ;;  %v4537_v51 = vld [vmem:[#allocation10 + $0x150] sm:$0xff]  }
 0x2c2   :  { %v2487_v56 = vcombine.low %v3765_v28, %v3766_v59  ;;  %v3782_v48 = vpack.i.b16 %v2421_v30, %v2325_v60  ;;  %v2472_v6 = vrot.slane %v2458_v1, %v5151_v42  ;;  %v2574_v44 = vcombine.low %v3777_v10, %v3778_v33  ;;  %v4541_v59 = vld [vmem:[#allocation10 + $0x158] sm:$0xff]   ;;  %v4540_v33 = vld [vmem:[#allocation10 + $0x190] sm:$0xff]  }
 0x2c3   :  { %v2443_v19 = vrot.slane %v2429_v35, %v5151_v42  ;;  %v2530_v9 = vrot.slane %v2516_v49, %v5151_v42  ;;  %v3784_v47 = vpack.i.b16 %v5219_v17, %v2377_v58  ;;  %v3785_v20 = vpack.i.b16 %v5253_v36, %v2395_v0  ;;  %v4530_v0 = vld [vmem:[#allocation10 + $0x100] sm:$0xff]   ;;  %v4542_v35 = vld [vmem:[#allocation10 + $0x118] sm:$0xff]  }
 0x2c4   :  { %v2473_v4 = vcombine.low %v5241_v26, %v2472_v6  ;;  %v2588_v28 = vrot.slane %v2574_v44, %v5151_v42  ;;  %v2501_v34 = vrot.slane %v2487_v56, %v5151_v42  ;;  %v3786_v43 = vpack.i.b16 %v5276_v63, %v2413_v3  ;;  %v4533_v3 = vld [vmem:[#allocation10 + $0x148] sm:$0xff]   ;;  %v4544_v49 = vld [vmem:[#allocation10 + $0x198] sm:$0xff]   ;;  %v4546_v6 = vld [vmem:[#allocation10 + $0x120] sm:$0xff]  }
 0x2c5   :  { %v2444_v60 = vcombine.low %v5244_v27, %v2443_v19  ;;  %v2531_v45 = vcombine.low %v2523_v25, %v2530_v9  ;;  %v2631_v21 = vcombine.low %v5186_v11, %v3784_v47  ;;  %v3772_v7 = vpack.i.b16 %v2383_v52, %v5194_v16  ;;  %v4549_v44 = vld [vmem:[#allocation10 + $0x168] sm:$0xff]   ;;  %v4548_v19 = vld [vmem:[#allocation10 + $0x1a0] sm:$0xff]  }
 0x2c6   :  { %v2480_v58 = vrot.slane %v2473_v4, %v5151_v42  ;;  %v2589_v38 = vcombine.low %v2581_v14, %v2588_v28  ;;  %v2502_v26 = vcombine.low %v2494_v41, %v2501_v34  ;;  %v2632_v10 = vcombine.low %v3785_v20, %v3786_v43  ;;  %v4535_v41 = vld [vmem:[#allocation10 + $0x1c8] sm:$0xff]   ;;  %v4553_v20 = vld [vmem:[#allocation10 + $0x170] sm:$0xff]   ;;  %v4557_v43 = vld [vmem:[#allocation10 + $0x178] sm:$0xff]  }
 0x2c7   :  { %v2451_v32 = vrot.slane %v2444_v60, %v5151_v42  ;;  %v2538_v13 = vrot.slane %v2531_v45, %v5151_v42  ;;  %v2639_v27 = vrot.slane %v2631_v21, %v5151_v42  ;;  %v2544_v18 = vcombine.low %v5166_v53, %v3772_v7  ;;  %v4551_v9 = vld [vmem:[#allocation10 + $0x1e8] sm:$0xff]   ;;  %v4555_v28 = vld [vmem:[#allocation10 + $0x1f0] sm:$0xff]   ;;  %v4559_v45 = vld [vmem:[#allocation10 + $0x1f8] sm:$0xff]  }
 0x2c8   :  { %3300 = vmatprep.mubr.bf16.mxu0 %v2480_v58  ;;  %v2596_v11 = vrot.slane %v2589_v38, %v5151_v42  ;;  %v2509_v16 = vrot.slane %v2502_v26, %v5151_v42  ;;  %v2646_v52 = vrot.slane %v2632_v10, %v5151_v42  ;;  %v2545_v14 = vcombine.low %v5261_v15, %v3774_v55  ;;  %v4545_v55 = vld [vmem:[#allocation10 + $0x160] sm:$0xff]   ;;  %v4550_v47 = vld [vmem:[#allocation10 + $0x128] sm:$0xff]   ;;  %v4554_v34 = vld [vmem:[#allocation10 + $0x130] sm:$0xff]  }
 0x2c9   :  { %3301 = vmatmul.mubr.bf16.vlgmr.msra.gmra.mrb[100].mxu0 %v2451_v32  ;;  %3340 = vmatprep.mubr.bf16.mxu1 %v2538_v13  ;;  %v5307_v23 = vrot.slane %v2544_v18, %v5151_v42  ;;  %v3781_v53 = vpack.i.b16 %v2403_v39, %v5222_v46  ;;  %v2602_v24 = vcombine.low %v5178_v5, %v5230_v29  ;;  %v4536_v29 = vld [vmem:[#allocation10 + $0x188] sm:$0xff]   ;;  %v4556_v60 = vld [vmem:[#allocation10 + $0x1b0] sm:$0xff]   ;;  %v4558_v21 = vld [vmem:[#allocation10 + $0x138] sm:$0xff]  }
 0x2ca   :  { %4128 = vmatpush3.bf16.msra.mxu0 %v4530_v0  ;;  %3380 = vmatprep.mubr.bf16.mxu0 %v2596_v11  ;;  %v2647_v25 = vcombine.low %v2639_v27, %v2646_v52  ;;  %v5315_v63 = vrot.slane %v2545_v14, %v5151_v42  ;;  %v3788_v15 = vpack.i.b16 %v2387_v61, %v5189_v12  ;;  %v4539_v12 = vld [vmem:[#allocation10 + $0x1d0] sm:$0xff]   ;;  %v4552_v4 = vld [vmem:[#allocation10 + $0x1a8] sm:$0xff]   ;;  %v4560_v7 = vld [vmem:[#allocation10 + $0x1b8] sm:$0xff]  }
 0x2cb   :  { %3341 = vmatmul.mubr.bf16.vlgmr.msra.gmra.mrb[100].mxu1 %v2509_v16  ;;  %4129 = vmatprep.subr.bf16.mxu0 %v4533_v3  ;;  %v2603_v31 = vcombine.low %v3781_v53, %v3782_v48  ;;  %v3789_v46 = vpack.i.b16 %v2405_v40, %v5224_v54  ;;  %v3790_v39 = vpack.i.b16 %v2423_v37, %v5263_v62  ;;  %v4538_v54 = vld [vmem:[#allocation10 + $0x110] sm:$0xff]   ;;  %v4547_v48 = vld [vmem:[#allocation10 + $0x1e0] sm:$0xff]   ;;  %v4562_v26 = vld [vmem:[#allocation10 + $0x208] sm:$0xff]  }
 0x2cc   :  { %4150 = vmatpush3.bf16.msra.mxu1 %v4532_v22  ;;  %v2654_v5 = vrot.slane %v2647_v25, %v5151_v42  ;;  %v2560_v57 = vcombine.low %v5307_v23, %v5315_v63  ;;  %v2660_v17 = vcombine.low %v5197_v2, %v3788_v15  ;;  %v2610_v61 = vrot.slane %v2602_v24, %v5151_v42  ;;  %v4543_v2 = vld [vmem:[#allocation10 + $0x1d8] sm:$0xff]   ;;  %v4561_v58 = vld [vmem:[#allocation10 + $0x200] sm:$0xff]   ;;  %v4563_v10 = vld [vmem:[#allocation10 + $0x210] sm:$0xff]  }
 0x2cd   :  { %4151 = vmatprep.subr.bf16.mxu1 %v4535_v41  ;;  %v2617_v30 = vrot.slane %v2603_v31, %v5151_v42  ;;  %v2661_v36 = vcombine.low %v3789_v46, %v3790_v39  ;;  %v4564_v32 = vld [vmem:[#allocation10 + $0x218] sm:$0xff]   ;;  %v4566_v13 = vld [vmem:[#allocation10 + $0x228] sm:$0xff]   ;;  %v4567_v3 = vld [vmem:[#allocation10 + $0x230] sm:$0xff]  }
 0x2ce   :  { %3420 = vmatprep.mubr.bf16.mxu1 %v2654_v5  ;;  %4130 = vmatpush3.bf16.msra.mxu0 %v4534_v50  ;;  %v2668_v40 = vrot.slane %v2660_v17, %v5151_v42  ;;  %v2567_v0 = vrot.slane %v2560_v57, %v5151_v42  ;;  %v4568_v27 = vld [vmem:[#allocation10 + $0x238] sm:$0xff]   ;;  %v4569_v18 = vld [vmem:[#allocation11] sm:$0xff]   ;;  %v4570_v11 = vld [vmem:[#allocation11 + $0x8] sm:$0xff]  }
 0x2cf   :  { %4131 = vmatprep.subr.bf16.mxu0 %v4537_v51  ;;  %v2618_v1 = vcombine.low %v2610_v61, %v2617_v30  ;;  %v2675_v62 = vrot.slane %v2661_v36, %v5151_v42  ;;  %v4571_v16 = vld [vmem:[#allocation11 + $0x10] sm:$0xff]   ;;  %v4572_v22 = vld [vmem:[#allocation11 + $0x18] sm:$0xff]   ;;  %v4573_v52 = vld [vmem:[#allocation11 + $0x20] sm:$0xff]  }
 0x2d0   :  { %4152 = vmatpush3.bf16.msra.mxu1 %v4536_v29  ;;  %v4574_v14 = vld [vmem:[#allocation11 + $0x28] sm:$0xff]   ;;  %v4575_v41 = vld [vmem:[#allocation11 + $0x30] sm:$0xff]   ;;  %v4576_v23 = vld [vmem:[#allocation11 + $0x38] sm:$0xff]  }
 0x2d1   :  { %4153 = vmatprep.subr.bf16.mxu1 %v4539_v12  ;;  %v2676_v37 = vcombine.low %v2668_v40, %v2675_v62  ;;  %v2625_v38 = vrot.slane %v2618_v1, %v5151_v42  ;;  %v3791_v24 = vld [vmem:[%s5382_s6] ss:$0 sm:$0xff] }
 0x2d2   :  { %4132 = vmatpush3.bf16.msra.mxu0 %v4538_v54 }
 0x2d3   :  { %4133 = vmatprep.subr.bf16.mxu0 %v4541_v59  ;;  %v5333_v56 = vrot.slane %v2676_v37, %v5151_v42  ;;  %v4565_v42 = vld [vmem:[#allocation10 + $0x220] sm:$0xff]  }
 0x2d4   :  { %4154 = vmatpush3.bf16.msra.mxu1 %v4540_v33 }
 0x2d5   :  { %4155 = vmatprep.subr.bf16.mxu1 %v4543_v2 }
 0x2d6   :  { %4134 = vmatpush3.bf16.msra.mxu0 %v4542_v35 }
 0x2d7   :  { %4135 = vmatprep.subr.bf16.mxu0 %v4545_v55 }
 0x2d8   :  { %4156 = vmatpush3.bf16.msra.mxu1 %v4544_v49 }
 0x2d9   :  { %4157 = vmatprep.subr.bf16.mxu1 %v4547_v48 }
 0x2da   :  { %4136 = vmatpush3.bf16.msra.mxu0 %v4546_v6  ;;  %v3864_v6 = vld [vmem:[%s5384_s8] ss:$0 sm:$0xff] }
 0x2db   :  { %4137 = vmatprep.subr.bf16.mxu0 %v4549_v44 }
 0x2dc   :  { %4158 = vmatpush3.bf16.msra.mxu1 %v4548_v19 }
 0x2dd   :  { %4159 = vmatprep.subr.bf16.mxu1 %v4551_v9 }
 0x2de   :  { %4138 = vmatpush3.bf16.msra.mxu0 %v4550_v47 }
 0x2df   :  { %4139 = vmatprep.subr.bf16.mxu0 %v4553_v20 }
 0x2e0   :  { %4160 = vmatpush3.bf16.msra.mxu1 %v4552_v4 }
 0x2e1   :  { %4161 = vmatprep.subr.bf16.mxu1 %v4555_v28 }
 0x2e2   :  { %4140 = vmatpush3.bf16.msra.mxu0 %v4554_v34 }
 0x2e3   :  { %4141 = vmatprep.subr.bf16.mxu0 %v4557_v43 }
 0x2e4   :  { %4162 = vmatpush3.bf16.msra.mxu1 %v4556_v60 }
 0x2e5   :  { %4163 = vmatprep.subr.bf16.mxu1 %v4559_v45 }
 0x2e6   :  { %4142 = vmatpush3.bf16.msra.mxu0 %v4558_v21 }
 0x2e7   :  { %4261 = vmatprep.subr.bf16.mxu0 %v4752_v8 }
 0x2e8   :  { %4164 = vmatpush3.bf16.msra.mxu1 %v4560_v7 }
 0x2e9   :  { %3381 = vmatmul.mubr.bf16.vlgmr.msra.gmra.mrb[104].mxu0 %v2567_v0  ;;  %4281 = vmatprep.subr.bf16.mxu1 %v4752_v8 }
 0x2ea   :  { %4262 = vmatpush3.bf16.msra.mxu0 %v4561_v58  ;;  %4277 = vmatprep.mubr.msk.bf16.mxu0 %vm4753_vm0, %v4752_v8 }
 0x2eb   :  { %3421 = vmatmul.mubr.bf16.vlgmr.msra.gmra.mrb[104].mxu1 %v2625_v38  ;;  %4263 = vmatprep.subr.bf16.mxu0 %v4752_v8 }
 0x2ec   :  { %4297 = vmatprep.mubr.msk.bf16.mxu1 %vm4753_vm0, %v4752_v8  ;;  %4282 = vmatpush3.bf16.msra.mxu1 %v4569_v18 }
 0x2ed   :  { %4283 = vmatprep.subr.bf16.mxu1 %v4752_v8 }
 0x2ee   :  { %4264 = vmatpush3.bf16.msra.mxu0 %v4562_v26 }
 0x2ef   :  { %4265 = vmatprep.subr.bf16.mxu0 %v4752_v8 }
 0x2f0   :  { %4284 = vmatpush3.bf16.msra.mxu1 %v4570_v11 }
 0x2f1   :  { %4285 = vmatprep.subr.bf16.mxu1 %v4752_v8 }
 0x2f2   :  { %4266 = vmatpush3.bf16.msra.mxu0 %v4563_v10 }
 0x2f3   :  { %4267 = vmatprep.subr.bf16.mxu0 %v4752_v8 }
 0x2f4   :  { %4286 = vmatpush3.bf16.msra.mxu1 %v4571_v16 }
 0x2f5   :  { %4287 = vmatprep.subr.bf16.mxu1 %v4752_v8 }
 0x2f6   :  { %4268 = vmatpush3.bf16.msra.mxu0 %v4564_v32 }
 0x2f7   :  { %4269 = vmatprep.subr.bf16.mxu0 %v4752_v8 }
 0x2f8   :  { %4288 = vmatpush3.bf16.msra.mxu1 %v4572_v22 }
 0x2f9   :  { %4289 = vmatprep.subr.bf16.mxu1 %v4752_v8 }
 0x2fa   :  { %4270 = vmatpush3.bf16.msra.mxu0 %v4565_v42 }
 0x2fb   :  { %4271 = vmatprep.subr.bf16.mxu0 %v4752_v8 }
 0x2fc   :  { %4290 = vmatpush3.bf16.msra.mxu1 %v4573_v52 }
 0x2fd   :  { %4291 = vmatprep.subr.bf16.mxu1 %v4752_v8 }
 0x2fe   :  { %4272 = vmatpush3.bf16.msra.mxu0 %v4566_v13 }
 0x2ff   :  { %4273 = vmatprep.subr.bf16.mxu0 %v4752_v8 }
 0x300   :  { %4292 = vmatpush3.bf16.msra.mxu1 %v4574_v14 }
 0x301   :  { %4293 = vmatprep.subr.bf16.mxu1 %v4752_v8 }
 0x302   :  { %4274 = vmatpush3.bf16.msra.mxu0 %v4567_v3 }
 0x303   :  { %4275 = vmatprep.subr.bf16.mxu0 %v4752_v8 }
 0x304   :  { %4294 = vmatpush3.bf16.msra.mxu1 %v4575_v41 }
 0x305   :  { %4295 = vmatprep.subr.bf16.mxu1 %v4752_v8 }
 0x306   :  { %4276 = vmatpush3.bf16.msra.mxu0 %v4568_v27 }
 0x308   :  { %4296 = vmatpush3.bf16.msra.mxu1 %v4576_v23 }
 0x309   :  { %4278 = vmatmul.mubr.bf16.vlgmr.msra.gmra.mrb[108].mxu0 %v5333_v56 }
 0x39c   :  { %v4099_v53 = vpop.f32.mrb[100].mxu0 }
 0x39d   :  { %v4100_v25 = vpop.f32.mrb[101].mxu0 }
 0x39e   :  { %v4101_v50 = vadd.f32 %v4100_v25, %v4099_v53  ;;  %v4102_v63 = vpop.f32.mrb[102].mxu0  ;;  %v4121_v15 = vpop.f32.mrb[100].mxu1 }
 0x39f   :  { %v4103_v51 = vpop.f32.mrb[103].mxu0  ;;  %v4122_v31 = vpop.f32.mrb[101].mxu1 }
 0x3a0   :  { %v3303_v46 = vadd.f32 %v4101_v50, %v3791_v24  ;;  %v4123_v5 = vadd.f32 %v4122_v31, %v4121_v15  ;;  %v4124_v29 = vpop.f32.mrb[102].mxu1 }
 0x3a1   :  { %v4125_v57 = vpop.f32.mrb[103].mxu1 }
 0x3a2   :  { %v3343_v39 = vadd.f32 %v4123_v5, %v3303_v46 }
 0x3bc   :  { %v4143_v17 = vpop.f32.mrb[104].mxu0 }
 0x3bd   :  { %v4144_v12 = vpop.f32.mrb[105].mxu0 }
 0x3be   :  { %v4145_v8 = vadd.f32 %v4144_v12, %v4143_v17  ;;  %v4146_v61 = vpop.f32.mrb[106].mxu0  ;;  %v4165_v30 = vpop.f32.mrb[104].mxu1 }
 0x3bf   :  { %v4147_v54 = vpop.f32.mrb[107].mxu0  ;;  %v4166_v36 = vpop.f32.mrb[105].mxu1 }
 0x3c0   :  { %v3383_v40 = vadd.f32 %v4145_v8, %v3343_v39  ;;  %v4167_v59 = vadd.f32 %v4166_v36, %v4165_v30  ;;  %v4168_v1 = vpop.f32.mrb[106].mxu1 }
 0x3c1   :  { %v4169_v33 = vpop.f32.mrb[107].mxu1 }
 0x3c2   :  { %v3423_v62 = vadd.f32 %v4167_v59, %v3383_v40 }
 0x3dc   :  { %v3462_v2 = vpop.f32.mrb[108].mxu0 }
 0x3dd   :  { %v3463_v35 = vadd.f32 %v3462_v2, %v3423_v62  ;;  %v4279_v37 = vpop.f32.mrb[109].mxu0 }
 0x3de   :  { %v3465_v55 = vpop.f32.mrb[110].mxu0 }
 0x3df   :  { %v3468_v49 = vmax.f32 %v3463_v35, 0.0  ;;  %v4280_v56 = vpop.f32.mrb[111].mxu0 }
 0x3e1   :  { %v3469_v48 = vpack.c.bf16 %v3468_v49, %v3468_v49 }
 0x3e3   :  { %4298 = vmatmul.mubr.bf16.vlgmr.msra.gmra.mrb[108].mxu1 %v3469_v48 }
 0x4b6   :  { %v3575_v44 = vpop.f32.mrb[108].mxu1 }
 0x4b7   :  { %v3576_v19 = vadd.f32 %v3864_v6, %v3575_v44  ;;  %v4299_v9 = vpop.f32.mrb[109].mxu1 }
 0x4b8   :  { %v3578_v47 = vpop.f32.mrb[110].mxu1 }
 0x4b9   :  { %3581 = vst [vmem:[#allocation13] sm:$0xff] %v3576_v19  ;;  %v4300_v20 = vpop.f32.mrb[111].mxu1 }
 0x4ba   :  { %4720 = shalt.err (!%p4717_p10)
}
 0x4bb   :  { %s4721_s8 = scalar_lea.hbm %s5385_s9, 128 }
 0x4bc   :  { %p4722_p11 = scmp.ne.s32.totalorder %s5385_s9, %s4721_s8  ;;  %p4725_p12 = scmp.lt.u32.totalorder %s4721_s8, %s5385_s9 }
 0x4be   :  { %p4727_p13 = pnand %p4725_p12, %p4722_p11 }
 0x4c0   :  { %4730 = shalt.err (!%p4727_p13)
}
 0x4c1   :  { %3591 = dma.vmem_to_hbm [thread:$0]  %s3589_s20, 128, %s5385_s9, [#allocation4]  }
 0x4c2   :  { %4739 = dma.done.wait [#allocation4], 128  }
 0x4c3   :  { %4740 = vsyncadd [#allocation4], 4294967168 }
 0x4c4   :  { %3595 = vsyncpa [#allocation3], 1 }
 0x4c5   :  { %3596 = vsyncpa [#allocation6], 1 }
 0x4c6   :  { %3597 = vsyncpa [#allocation9], 1 }
 0x4c7   :  { %3598 = vsyncpa [#allocation12], 1 }
 0x4c8   :  { %3599 = vsyncpa [#allocation4], 1 }

</bundles_post_ra>
